<compile_context>
chip_gen: v5e
topology: v5e:2x2
jax: 0.10.0
libtpu: 0.0.40
codegen_flags: <defaults>
</compile_context>

<pallas_src>
import math
import functools

import jax
import jax.numpy as jnp
import numpy as np
from jax.experimental import pallas as pl
from jax.experimental.pallas import tpu as pltpu

# ----------------------------- model hyperparams ----------------------------
VOCAB_SIZE = 64
EMBED_DIM = 32
NUM_HEADS = 4
NUM_LAYERS = 2
BLOCK_SIZE = 16
SEQ_LEN = 8
BATCH = 2
EPS = 1e-5

FF_DIM = 4 * EMBED_DIM
_VEC_ROWS_PER_LAYER = 8  # ln1w ln1b bqkv bout ln2w ln2b bff1 bff2


# --------------------------------- kernel -----------------------------------
def _layernorm(v, w, b):
    mu = jnp.mean(v, axis=-1, keepdims=True)
    var = jnp.mean((v - mu) ** 2, axis=-1, keepdims=True)
    return (v - mu) * jax.lax.rsqrt(var + EPS) * w + b


def gpt_fused_kernel(idx_ref, slab32_ref, qkv_ref, ff1_ref, lm_ref, vec_ref,
                     out_ref, *, num_layers, num_heads):
    """Entire SmallGPT forward on one (B*S, E) activation slab.

    All parameters live in 5 packed VMEM slabs; sub-matrices / bias rows are
    carved out with static slices.
    """
    BS = idx_ref.shape[0]                 # B*S rows
    V = VOCAB_SIZE
    E = EMBED_DIM
    FF = FF_DIM
    dh = E // num_heads
    scale = 1.0 / math.sqrt(dh)

    # ---- fused embedding lookup: one-hot(idx) @ tok_emb (runs on the MXU) ----
    vocab_iota = jax.lax.broadcasted_iota(jnp.int32, (BS, V), 1)
    tok_onehot = (vocab_iota == idx_ref[...]).astype(jnp.float32)        # (BS, V)
    tok_tab = slab32_ref[0:V, :]                                         # (V, E)
    pos = slab32_ref[V:V + BS, :]                                        # (BS, E)
    x = jnp.dot(tok_onehot, tok_tab,
                preferred_element_type=jnp.float32) + pos                # (BS, E)

    # block-diagonal causal mask (precomputed wrapper-side), shared by layers
    mask = vec_ref[0:BS, 0:BS]                                           # (BS, BS)

    r32 = V + BS                    # first per-layer row in slab32
    stride32 = E + FF               # Wo^T rows + Wff2^T rows per layer
    for l in range(num_layers):
        # --- hoist this layer's params once (all static slices) ---
        vb = BS + _VEC_ROWS_PER_LAYER * l
        ln1w = vec_ref[vb + 0:vb + 1, 0:E]
        ln1b = vec_ref[vb + 1:vb + 2, 0:E]
        bqkv = vec_ref[vb + 2:vb + 3, 0:3 * E]
        bout = vec_ref[vb + 3:vb + 4, 0:E]
        ln2w = vec_ref[vb + 4:vb + 5, 0:E]
        ln2b = vec_ref[vb + 5:vb + 6, 0:E]
        bff1 = vec_ref[vb + 6:vb + 7, 0:FF]
        bff2 = vec_ref[vb + 7:vb + 8, 0:E]

        wqkv = qkv_ref[E * l:E * (l + 1), :]                             # (E, 3E)
        wff1 = ff1_ref[E * l:E * (l + 1), :]                             # (E, FF)
        base = r32 + stride32 * l
        wo_t = slab32_ref[base:base + E, :]                              # (E, E)
        wff2 = slab32_ref[base + E:base + E + FF, :]                     # (FF, E)

        # --- pre-LN + causal multi-head self-attention ---
        h = _layernorm(x, ln1w, ln1b)
        qkv = jnp.dot(h, wqkv, preferred_element_type=jnp.float32) + bqkv  # (BS, 3E)
        q = qkv[:, 0:E]
        k = qkv[:, E:2 * E]
        v = qkv[:, 2 * E:3 * E]

        ctx_heads = []
        for hd in range(num_heads):
            lo, hi = hd * dh, (hd + 1) * dh
            qh = q[:, lo:hi]
            kh = k[:, lo:hi]
            vh = v[:, lo:hi]
            # q @ k^T without materializing kh.T (MXU handles the transpose)
            s = jax.lax.dot_general(
                qh, kh, (((1,), (1,)), ((), ())),
                preferred_element_type=jnp.float32) * scale + mask
            s = s - jnp.max(s, axis=-1, keepdims=True)
            p = jnp.exp(s)
            p = p * pl.reciprocal(jnp.sum(p, axis=-1, keepdims=True), approx=True)
            ctx_heads.append(jnp.dot(p, vh, preferred_element_type=jnp.float32))
        ctx = jnp.concatenate(ctx_heads, axis=-1)                        # (BS, E)
        attn = jnp.dot(ctx, wo_t, preferred_element_type=jnp.float32) + bout
        x = x + attn                    # residual (dropout == identity at eval)

        # --- pre-LN + feed-forward ---
        h2 = _layernorm(x, ln2w, ln2b)
        f = jnp.dot(h2, wff1, preferred_element_type=jnp.float32) + bff1
        f = jnp.maximum(f, 0.0)
        x = x + jnp.dot(f, wff2, preferred_element_type=jnp.float32) + bff2

    # --- final LN + LM head ---
    vg = BS + _VEC_ROWS_PER_LAYER * num_layers
    lnfw = vec_ref[vg + 0:vg + 1, 0:E]
    lnfb = vec_ref[vg + 1:vg + 2, 0:E]
    blm = vec_ref[vg + 2:vg + 3, 0:V]
    h = _layernorm(x, lnfw, lnfb)
    out_ref[...] = jnp.dot(h, lm_ref[...],
                           preferred_element_type=jnp.float32) + blm


# -------------------------------- wrappers -----------------------------------
def prepare_kernel_inputs(params, batch, seq_len):
    """One-time wrapper-side plumbing: pre-transpose, fuse QKV, and pack all
    parameters into 5 f32 slabs so the kernel start is a handful of DMAs
    instead of ~41."""
    bs = batch * seq_len
    E, V, FF = EMBED_DIM, VOCAB_SIZE, FF_DIM

    # --- slab32: width-32 matrices, every sub-matrix 8-row aligned ---
    rows32 = [jnp.asarray(params["tok_emb"], jnp.float32),                 # (V, E)
              jnp.tile(jnp.asarray(params["pos_emb"][:seq_len], jnp.float32),
                       (batch, 1))]                                        # (bs, E)

    qkv_rows, ff1_rows = [], []

    # --- slab_vec: mask rows + all (1, ·) vectors, padded to 128 lanes ---
    r = np.arange(bs)
    allowed = ((r[:, None] // seq_len) == (r[None, :] // seq_len)) & \
              (r[None, :] <= r[:, None])
    mask = np.where(allowed, 0.0, -1e9).astype(np.float32)                 # (bs, bs)
    vec_rows = [np.pad(mask, ((0, 0), (0, 128 - bs)))]

    def vrow(v):
        v = np.asarray(v, np.float32).reshape(1, -1)
        return np.pad(v, ((0, 0), (0, 128 - v.shape[1])))

    for p in params["layers"]:
        rows32 += [jnp.asarray(p["w_out"].T, jnp.float32),                 # (E, E)
                   jnp.asarray(p["w_ff2"].T, jnp.float32)]                 # (FF, E)
        qkv_rows.append(jnp.asarray(p["w_qkv"].T, jnp.float32))            # (E, 3E) fused
        ff1_rows.append(jnp.asarray(p["w_ff1"].T, jnp.float32))            # (E, FF)
        vec_rows += [vrow(p["ln1_w"]), vrow(p["ln1_b"]), vrow(p["b_qkv"]),
                     vrow(p["b_out"]), vrow(p["ln2_w"]), vrow(p["ln2_b"]),
                     vrow(p["b_ff1"]), vrow(p["b_ff2"])]
    vec_rows += [vrow(params["lnf_w"]), vrow(params["lnf_b"]),
                 vrow(params["b_lm"])]

    slab32 = jnp.concatenate(rows32, axis=0)                               # (400, 32)
    slab_qkv = jnp.concatenate(qkv_rows, axis=0)                           # (64, 96)
    slab_ff1 = jnp.concatenate(ff1_rows, axis=0)                           # (64, 128)
    slab_lm = jnp.asarray(params["w_lm"].T, jnp.float32)                   # (E, V)
    slab_vec = jnp.asarray(np.concatenate(vec_rows, axis=0), jnp.float32)  # (35, 128)
    return slab32, slab_qkv, slab_ff1, slab_lm, slab_vec


def small_gpt_forward(idx, kernel_inputs):
    """Single fused pallas_call for the whole forward pass (no grid)."""
    B, S = idx.shape
    BS = B * S
    V = VOCAB_SIZE
    idx2d = idx.reshape(BS, 1).astype(jnp.int32)

    vmem_spec = pl.BlockSpec(memory_space=pltpu.MemorySpace.VMEM)
    kernel = functools.partial(gpt_fused_kernel,
                               num_layers=NUM_LAYERS, num_heads=NUM_HEADS)
    logits_flat = pl.pallas_call(
        kernel,
        out_shape=jax.ShapeDtypeStruct((BS, V), jnp.float32),
        in_specs=[vmem_spec] * (1 + len(kernel_inputs)),
        out_specs=vmem_spec,
    )(idx2d, *kernel_inputs)
    # contiguous row-major reshape back to (B, S, V) — metadata only.
    return logits_flat.reshape(B, S, V)


# -------------------------- pure-JAX reference check -------------------------
def _ref_layernorm(v, w, b):
    mu = jnp.mean(v, axis=-1, keepdims=True)
    var = jnp.mean((v - mu) ** 2, axis=-1, keepdims=True)
    return (v - mu) / jnp.sqrt(var + EPS) * w + b


def small_gpt_reference(idx, params):
    tok_emb = jnp.take(params["tok_emb"], idx, axis=0)
    pos_emb = jnp.take(params["pos_emb"], jnp.arange(idx.shape[1]), axis=0)
    x = tok_emb + pos_emb[None, :, :]
    B, S, E = x.shape
    dh = E // NUM_HEADS
    causal = jnp.where(
        jnp.arange(S)[None, :] > jnp.arange(S)[:, None], -jnp.inf, 0.0
    )
    for p in params["layers"]:
        h = _ref_layernorm(x, p["ln1_w"], p["ln1_b"])
        qkv = h @ p["w_qkv"].T + p["b_qkv"]
        q, k, v = jnp.split(qkv, 3, axis=-1)
        q = q.reshape(B, S, NUM_HEADS, dh).transpose(0, 2, 1, 3)
        k = k.reshape(B, S, NUM_HEADS, dh).transpose(0, 2, 1, 3)
        v = v.reshape(B, S, NUM_HEADS, dh).transpose(0, 2, 1, 3)
        s = jnp.einsum("bhqd,bhkd->bhqk", q, k) / math.sqrt(dh) + causal
        pattn = jax.nn.softmax(s, axis=-1)
        o = jnp.einsum("bhqk,bhkd->bhqd", pattn, v)
        o = o.transpose(0, 2, 1, 3).reshape(B, S, E)
        x = x + (o @ p["w_out"].T + p["b_out"])
        h2 = _ref_layernorm(x, p["ln2_w"], p["ln2_b"])
        f = jnp.maximum(h2 @ p["w_ff1"].T + p["b_ff1"], 0.0)
        x = x + (f @ p["w_ff2"].T + p["b_ff2"])
    x = _ref_layernorm(x, params["lnf_w"], params["lnf_b"])
    return x @ params["w_lm"].T + params["b_lm"]


# ------------------------------- param init ----------------------------------
def init_params(key):
    E, V = EMBED_DIM, VOCAB_SIZE
    FF = FF_DIM
    keys = jax.random.split(key, 8 + NUM_LAYERS * 8)
    ki = iter(range(len(keys)))

    def nrm(k, shape, scale=0.02):
        return (scale * jax.random.normal(keys[k], shape)).astype(jnp.float32)

    w_lm = nrm(next(ki), (V, E))                       # tied with token embedding
    params = {
        "tok_emb": w_lm,                               # weight tying
        "pos_emb": nrm(next(ki), (BLOCK_SIZE, E)),
        "lnf_w": jnp.ones((1, E), jnp.float32),
        "lnf_b": jnp.zeros((1, E), jnp.float32),
        "w_lm": w_lm,
        "b_lm": nrm(next(ki), (1, V)),
        "layers": [],
    }
    for _ in range(NUM_LAYERS):
        lp = {
            "ln1_w": jnp.ones((1, E), jnp.float32),
            "ln1_b": jnp.zeros((1, E), jnp.float32),
            "w_qkv": nrm(next(ki), (3 * E, E)),
            "b_qkv": nrm(next(ki), (1, 3 * E)),
            "w_out": nrm(next(ki), (E, E)),
            "b_out": nrm(next(ki), (1, E)),
            "ln2_w": jnp.ones((1, E), jnp.float32),
            "ln2_b": jnp.zeros((1, E), jnp.float32),
            "w_ff1": nrm(next(ki), (FF, E)),
            "b_ff1": nrm(next(ki), (1, FF)),
            "w_ff2": nrm(next(ki), (E, FF)),
            "b_ff2": nrm(next(ki), (1, E)),
        }
        params["layers"].append(lp)
    return params


# ---------------------------------- main --------------------------------------
if __name__ == "__main__":
    key = jax.random.PRNGKey(0)
    pkey, ikey = jax.random.split(key)
    params = init_params(pkey)
    idx = jax.random.randint(ikey, (BATCH, SEQ_LEN), 0, VOCAB_SIZE, dtype=jnp.int32)

    kernel_inputs = prepare_kernel_inputs(params, BATCH, SEQ_LEN)
    logits = small_gpt_forward(idx, kernel_inputs)
    logits = jax.block_until_ready(logits)
    assert logits.shape == (BATCH, SEQ_LEN, VOCAB_SIZE)

    ref = jax.block_until_ready(small_gpt_reference(idx, params))
    np.testing.assert_allclose(np.asarray(logits), np.asarray(ref),
                               rtol=2e-3, atol=2e-3)
    print("KERNEL_OK")
</pallas_src>

<mosaic_0001>
module attributes {stable_mosaic.version = 11 : i64} {
  func.func @gpt_fused_kernel(%arg0: memref<16x1xi32, #tpu.memory_space<vmem>>, %arg1: memref<400x32xf32, #tpu.memory_space<vmem>>, %arg2: memref<64x96xf32, #tpu.memory_space<vmem>>, %arg3: memref<64x128xf32, #tpu.memory_space<vmem>>, %arg4: memref<32x64xf32, #tpu.memory_space<vmem>>, %arg5: memref<35x128xf32, #tpu.memory_space<vmem>>, %arg6: memref<16x64xf32, #tpu.memory_space<vmem>>) attributes {dimension_semantics = [], scalar_prefetch = 0 : i64, scratch_operands = 0 : i64, tpu.core_type = #tpu.core_type<tc>} {
    %0 = tpu.iota {dimensions = array<i32: 1>} : vector<16x64xi32>
    %c0 = arith.constant 0 : index
    %c0_0 = arith.constant 0 : index
    %1 = vector.load %arg0[%c0, %c0_0] : memref<16x1xi32, #tpu.memory_space<vmem>>, vector<16x1xi32>
    %2 = vector.broadcast %1 : vector<16x1xi32> to vector<16x64xi32>
    %3 = arith.cmpi eq, %0, %2 : vector<16x64xi32>
    %4 = arith.extui %3 : vector<16x64xi1> to vector<16x64xi32>
    %5 = arith.sitofp %4 : vector<16x64xi32> to vector<16x64xf32>
    %c0_1 = arith.constant 0 : index
    %c0_2 = arith.constant 0 : index
    %6 = vector.load %arg1[%c0_1, %c0_2] : memref<400x32xf32, #tpu.memory_space<vmem>>, vector<64x32xf32>
    %c64 = arith.constant 64 : index
    %c0_3 = arith.constant 0 : index
    %7 = vector.load %arg1[%c64, %c0_3] : memref<400x32xf32, #tpu.memory_space<vmem>>, vector<16x32xf32>
    %cst = arith.constant dense<0.000000e+00> : vector<16x32xf32>
    %8 = tpu.matmul %5, %6, %cst {dimension_numbers = #tpu.dot_dimension_numbers<[1], [0], [0], [1], [0, 0, 1, 1], [], []>} : vector<16x64xf32>, vector<64x32xf32>, vector<16x32xf32> -> vector<16x32xf32>
    %9 = arith.addf %8, %7 : vector<16x32xf32>
    %c0_4 = arith.constant 0 : index
    %c0_5 = arith.constant 0 : index
    %10 = vector.load %arg5[%c0_4, %c0_5] : memref<35x128xf32, #tpu.memory_space<vmem>>, vector<16x16xf32>
    %c16 = arith.constant 16 : index
    %c0_6 = arith.constant 0 : index
    %11 = vector.load %arg5[%c16, %c0_6] : memref<35x128xf32, #tpu.memory_space<vmem>>, vector<1x32xf32>
    %c17 = arith.constant 17 : index
    %c0_7 = arith.constant 0 : index
    %12 = vector.load %arg5[%c17, %c0_7] : memref<35x128xf32, #tpu.memory_space<vmem>>, vector<1x32xf32>
    %c18 = arith.constant 18 : index
    %c0_8 = arith.constant 0 : index
    %13 = vector.load %arg5[%c18, %c0_8] : memref<35x128xf32, #tpu.memory_space<vmem>>, vector<1x96xf32>
    %c19 = arith.constant 19 : index
    %c0_9 = arith.constant 0 : index
    %14 = vector.load %arg5[%c19, %c0_9] : memref<35x128xf32, #tpu.memory_space<vmem>>, vector<1x32xf32>
    %c20 = arith.constant 20 : index
    %c0_10 = arith.constant 0 : index
    %15 = vector.load %arg5[%c20, %c0_10] : memref<35x128xf32, #tpu.memory_space<vmem>>, vector<1x32xf32>
    %c21 = arith.constant 21 : index
    %c0_11 = arith.constant 0 : index
    %16 = vector.load %arg5[%c21, %c0_11] : memref<35x128xf32, #tpu.memory_space<vmem>>, vector<1x32xf32>
    %c22 = arith.constant 22 : index
    %c0_12 = arith.constant 0 : index
    %17 = vector.load %arg5[%c22, %c0_12] : memref<35x128xf32, #tpu.memory_space<vmem>>, vector<1x128xf32>
    %c23 = arith.constant 23 : index
    %c0_13 = arith.constant 0 : index
    %18 = vector.load %arg5[%c23, %c0_13] : memref<35x128xf32, #tpu.memory_space<vmem>>, vector<1x32xf32>
    %c0_14 = arith.constant 0 : index
    %c0_15 = arith.constant 0 : index
    %19 = vector.load %arg2[%c0_14, %c0_15] : memref<64x96xf32, #tpu.memory_space<vmem>>, vector<32x96xf32>
    %c0_16 = arith.constant 0 : index
    %c0_17 = arith.constant 0 : index
    %20 = vector.load %arg3[%c0_16, %c0_17] : memref<64x128xf32, #tpu.memory_space<vmem>>, vector<32x128xf32>
    %c80 = arith.constant 80 : index
    %c0_18 = arith.constant 0 : index
    %21 = vector.load %arg1[%c80, %c0_18] : memref<400x32xf32, #tpu.memory_space<vmem>>, vector<32x32xf32>
    %c112 = arith.constant 112 : index
    %c0_19 = arith.constant 0 : index
    %22 = vector.load %arg1[%c112, %c0_19] : memref<400x32xf32, #tpu.memory_space<vmem>>, vector<128x32xf32>
    %cst_20 = arith.constant dense<0.000000e+00> : vector<16xf32>
    %23 = vector.multi_reduction <add>, %9, %cst_20 [1] : vector<16x32xf32> to vector<16xf32>
    %24 = vector.shape_cast %23 : vector<16xf32> to vector<16x1xf32>
    %cst_21 = arith.constant 3.200000e+01 : f32
    %25 = vector.broadcast %cst_21 : f32 to vector<16x1xf32>
    %26 = arith.divf %24, %25 : vector<16x1xf32>
    %27 = vector.broadcast %26 : vector<16x1xf32> to vector<16x32xf32>
    %28 = arith.subf %9, %27 : vector<16x32xf32>
    %29 = arith.mulf %28, %28 : vector<16x32xf32>
    %cst_22 = arith.constant dense<0.000000e+00> : vector<16xf32>
    %30 = vector.multi_reduction <add>, %29, %cst_22 [1] : vector<16x32xf32> to vector<16xf32>
    %31 = vector.shape_cast %30 : vector<16xf32> to vector<16x1xf32>
    %cst_23 = arith.constant 3.200000e+01 : f32
    %32 = vector.broadcast %cst_23 : f32 to vector<16x1xf32>
    %33 = arith.divf %31, %32 : vector<16x1xf32>
    %34 = vector.broadcast %26 : vector<16x1xf32> to vector<16x32xf32>
    %35 = arith.subf %9, %34 : vector<16x32xf32>
    %cst_24 = arith.constant 9.99999974E-6 : f32
    %36 = vector.broadcast %cst_24 : f32 to vector<16x1xf32>
    %37 = arith.addf %33, %36 : vector<16x1xf32>
    %38 = math.rsqrt %37 : vector<16x1xf32>
    %39 = vector.broadcast %38 : vector<16x1xf32> to vector<16x32xf32>
    %40 = arith.mulf %35, %39 : vector<16x32xf32>
    %41 = vector.broadcast %11 : vector<1x32xf32> to vector<16x32xf32>
    %42 = arith.mulf %40, %41 : vector<16x32xf32>
    %43 = vector.broadcast %12 : vector<1x32xf32> to vector<16x32xf32>
    %44 = arith.addf %42, %43 : vector<16x32xf32>
    %cst_25 = arith.constant dense<0.000000e+00> : vector<16x96xf32>
    %45 = tpu.matmul %44, %19, %cst_25 {dimension_numbers = #tpu.dot_dimension_numbers<[1], [0], [0], [1], [0, 0, 1, 1], [], []>} : vector<16x32xf32>, vector<32x96xf32>, vector<16x96xf32> -> vector<16x96xf32>
    %46 = vector.broadcast %13 : vector<1x96xf32> to vector<16x96xf32>
    %47 = arith.addf %45, %46 : vector<16x96xf32>
    %48 = vector.extract_strided_slice %47 {offsets = [0, 0], sizes = [16, 32], strides = [1, 1]} : vector<16x96xf32> to vector<16x32xf32>
    %49 = vector.extract_strided_slice %47 {offsets = [0, 32], sizes = [16, 32], strides = [1, 1]} : vector<16x96xf32> to vector<16x32xf32>
    %50 = vector.extract_strided_slice %47 {offsets = [0, 64], sizes = [16, 32], strides = [1, 1]} : vector<16x96xf32> to vector<16x32xf32>
    %51 = vector.extract_strided_slice %48 {offsets = [0, 0], sizes = [16, 8], strides = [1, 1]} : vector<16x32xf32> to vector<16x8xf32>
    %52 = vector.extract_strided_slice %49 {offsets = [0, 0], sizes = [16, 8], strides = [1, 1]} : vector<16x32xf32> to vector<16x8xf32>
    %53 = vector.extract_strided_slice %50 {offsets = [0, 0], sizes = [16, 8], strides = [1, 1]} : vector<16x32xf32> to vector<16x8xf32>
    %cst_26 = arith.constant dense<0.000000e+00> : vector<16x16xf32>
    %54 = tpu.matmul %51, %52, %cst_26 {dimension_numbers = #tpu.dot_dimension_numbers<[1], [1], [0], [0], [0, 0, 1, 0], [], []>} : vector<16x8xf32>, vector<16x8xf32>, vector<16x16xf32> -> vector<16x16xf32>
    %cst_27 = arith.constant 0.353553385 : f32
    %55 = vector.broadcast %cst_27 : f32 to vector<16x16xf32>
    %56 = arith.mulf %54, %55 : vector<16x16xf32>
    %57 = arith.addf %56, %10 : vector<16x16xf32>
    %cst_28 = arith.constant dense<0xFF800000> : vector<16xf32>
    %58 = vector.multi_reduction <maximumf>, %57, %cst_28 [1] : vector<16x16xf32> to vector<16xf32>
    %59 = vector.shape_cast %58 : vector<16xf32> to vector<16x1xf32>
    %60 = vector.broadcast %59 : vector<16x1xf32> to vector<16x16xf32>
    %61 = arith.subf %57, %60 : vector<16x16xf32>
    %62 = math.exp %61 : vector<16x16xf32>
    %cst_29 = arith.constant dense<0.000000e+00> : vector<16xf32>
    %63 = vector.multi_reduction <add>, %62, %cst_29 [1] : vector<16x16xf32> to vector<16xf32>
    %64 = vector.shape_cast %63 : vector<16xf32> to vector<16x1xf32>
    %65 = tpu.reciprocal %64 {approx = true} : vector<16x1xf32> -> vector<16x1xf32>
    %66 = vector.broadcast %65 : vector<16x1xf32> to vector<16x16xf32>
    %67 = arith.mulf %62, %66 : vector<16x16xf32>
    %cst_30 = arith.constant dense<0.000000e+00> : vector<16x8xf32>
    %68 = tpu.matmul %67, %53, %cst_30 {dimension_numbers = #tpu.dot_dimension_numbers<[1], [0], [0], [1], [0, 0, 1, 1], [], []>} : vector<16x16xf32>, vector<16x8xf32>, vector<16x8xf32> -> vector<16x8xf32>
    %69 = vector.extract_strided_slice %48 {offsets = [0, 8], sizes = [16, 8], strides = [1, 1]} : vector<16x32xf32> to vector<16x8xf32>
    %70 = vector.extract_strided_slice %49 {offsets = [0, 8], sizes = [16, 8], strides = [1, 1]} : vector<16x32xf32> to vector<16x8xf32>
    %71 = vector.extract_strided_slice %50 {offsets = [0, 8], sizes = [16, 8], strides = [1, 1]} : vector<16x32xf32> to vector<16x8xf32>
    %cst_31 = arith.constant dense<0.000000e+00> : vector<16x16xf32>
    %72 = tpu.matmul %69, %70, %cst_31 {dimension_numbers = #tpu.dot_dimension_numbers<[1], [1], [0], [0], [0, 0, 1, 0], [], []>} : vector<16x8xf32>, vector<16x8xf32>, vector<16x16xf32> -> vector<16x16xf32>
    %cst_32 = arith.constant 0.353553385 : f32
    %73 = vector.broadcast %cst_32 : f32 to vector<16x16xf32>
    %74 = arith.mulf %72, %73 : vector<16x16xf32>
    %75 = arith.addf %74, %10 : vector<16x16xf32>
    %cst_33 = arith.constant dense<0xFF800000> : vector<16xf32>
    %76 = vector.multi_reduction <maximumf>, %75, %cst_33 [1] : vector<16x16xf32> to vector<16xf32>
    %77 = vector.shape_cast %76 : vector<16xf32> to vector<16x1xf32>
    %78 = vector.broadcast %77 : vector<16x1xf32> to vector<16x16xf32>
    %79 = arith.subf %75, %78 : vector<16x16xf32>
    %80 = math.exp %79 : vector<16x16xf32>
    %cst_34 = arith.constant dense<0.000000e+00> : vector<16xf32>
    %81 = vector.multi_reduction <add>, %80, %cst_34 [1] : vector<16x16xf32> to vector<16xf32>
    %82 = vector.shape_cast %81 : vector<16xf32> to vector<16x1xf32>
    %83 = tpu.reciprocal %82 {approx = true} : vector<16x1xf32> -> vector<16x1xf32>
    %84 = vector.broadcast %83 : vector<16x1xf32> to vector<16x16xf32>
    %85 = arith.mulf %80, %84 : vector<16x16xf32>
    %cst_35 = arith.constant dense<0.000000e+00> : vector<16x8xf32>
    %86 = tpu.matmul %85, %71, %cst_35 {dimension_numbers = #tpu.dot_dimension_numbers<[1], [0], [0], [1], [0, 0, 1, 1], [], []>} : vector<16x16xf32>, vector<16x8xf32>, vector<16x8xf32> -> vector<16x8xf32>
    %87 = vector.extract_strided_slice %48 {offsets = [0, 16], sizes = [16, 8], strides = [1, 1]} : vector<16x32xf32> to vector<16x8xf32>
    %88 = vector.extract_strided_slice %49 {offsets = [0, 16], sizes = [16, 8], strides = [1, 1]} : vector<16x32xf32> to vector<16x8xf32>
    %89 = vector.extract_strided_slice %50 {offsets = [0, 16], sizes = [16, 8], strides = [1, 1]} : vector<16x32xf32> to vector<16x8xf32>
    %cst_36 = arith.constant dense<0.000000e+00> : vector<16x16xf32>
    %90 = tpu.matmul %87, %88, %cst_36 {dimension_numbers = #tpu.dot_dimension_numbers<[1], [1], [0], [0], [0, 0, 1, 0], [], []>} : vector<16x8xf32>, vector<16x8xf32>, vector<16x16xf32> -> vector<16x16xf32>
    %cst_37 = arith.constant 0.353553385 : f32
    %91 = vector.broadcast %cst_37 : f32 to vector<16x16xf32>
    %92 = arith.mulf %90, %91 : vector<16x16xf32>
    %93 = arith.addf %92, %10 : vector<16x16xf32>
    %cst_38 = arith.constant dense<0xFF800000> : vector<16xf32>
    %94 = vector.multi_reduction <maximumf>, %93, %cst_38 [1] : vector<16x16xf32> to vector<16xf32>
    %95 = vector.shape_cast %94 : vector<16xf32> to vector<16x1xf32>
    %96 = vector.broadcast %95 : vector<16x1xf32> to vector<16x16xf32>
    %97 = arith.subf %93, %96 : vector<16x16xf32>
    %98 = math.exp %97 : vector<16x16xf32>
    %cst_39 = arith.constant dense<0.000000e+00> : vector<16xf32>
    %99 = vector.multi_reduction <add>, %98, %cst_39 [1] : vector<16x16xf32> to vector<16xf32>
    %100 = vector.shape_cast %99 : vector<16xf32> to vector<16x1xf32>
    %101 = tpu.reciprocal %100 {approx = true} : vector<16x1xf32> -> vector<16x1xf32>
    %102 = vector.broadcast %101 : vector<16x1xf32> to vector<16x16xf32>
    %103 = arith.mulf %98, %102 : vector<16x16xf32>
    %cst_40 = arith.constant dense<0.000000e+00> : vector<16x8xf32>
    %104 = tpu.matmul %103, %89, %cst_40 {dimension_numbers = #tpu.dot_dimension_numbers<[1], [0], [0], [1], [0, 0, 1, 1], [], []>} : vector<16x16xf32>, vector<16x8xf32>, vector<16x8xf32> -> vector<16x8xf32>
    %105 = vector.extract_strided_slice %48 {offsets = [0, 24], sizes = [16, 8], strides = [1, 1]} : vector<16x32xf32> to vector<16x8xf32>
    %106 = vector.extract_strided_slice %49 {offsets = [0, 24], sizes = [16, 8], strides = [1, 1]} : vector<16x32xf32> to vector<16x8xf32>
    %107 = vector.extract_strided_slice %50 {offsets = [0, 24], sizes = [16, 8], strides = [1, 1]} : vector<16x32xf32> to vector<16x8xf32>
    %cst_41 = arith.constant dense<0.000000e+00> : vector<16x16xf32>
    %108 = tpu.matmul %105, %106, %cst_41 {dimension_numbers = #tpu.dot_dimension_numbers<[1], [1], [0], [0], [0, 0, 1, 0], [], []>} : vector<16x8xf32>, vector<16x8xf32>, vector<16x16xf32> -> vector<16x16xf32>
    %cst_42 = arith.constant 0.353553385 : f32
    %109 = vector.broadcast %cst_42 : f32 to vector<16x16xf32>
    %110 = arith.mulf %108, %109 : vector<16x16xf32>
    %111 = arith.addf %110, %10 : vector<16x16xf32>
    %cst_43 = arith.constant dense<0xFF800000> : vector<16xf32>
    %112 = vector.multi_reduction <maximumf>, %111, %cst_43 [1] : vector<16x16xf32> to vector<16xf32>
    %113 = vector.shape_cast %112 : vector<16xf32> to vector<16x1xf32>
    %114 = vector.broadcast %113 : vector<16x1xf32> to vector<16x16xf32>
    %115 = arith.subf %111, %114 : vector<16x16xf32>
    %116 = math.exp %115 : vector<16x16xf32>
    %cst_44 = arith.constant dense<0.000000e+00> : vector<16xf32>
    %117 = vector.multi_reduction <add>, %116, %cst_44 [1] : vector<16x16xf32> to vector<16xf32>
    %118 = vector.shape_cast %117 : vector<16xf32> to vector<16x1xf32>
    %119 = tpu.reciprocal %118 {approx = true} : vector<16x1xf32> -> vector<16x1xf32>
    %120 = vector.broadcast %119 : vector<16x1xf32> to vector<16x16xf32>
    %121 = arith.mulf %116, %120 : vector<16x16xf32>
    %cst_45 = arith.constant dense<0.000000e+00> : vector<16x8xf32>
    %122 = tpu.matmul %121, %107, %cst_45 {dimension_numbers = #tpu.dot_dimension_numbers<[1], [0], [0], [1], [0, 0, 1, 1], [], []>} : vector<16x16xf32>, vector<16x8xf32>, vector<16x8xf32> -> vector<16x8xf32>
    %123 = tpu.concatenate %68, %86, %104, %122 in 1 : vector<16x8xf32>, vector<16x8xf32>, vector<16x8xf32>, vector<16x8xf32> -> vector<16x32xf32>
    %cst_46 = arith.constant dense<0.000000e+00> : vector<16x32xf32>
    %124 = tpu.matmul %123, %21, %cst_46 {dimension_numbers = #tpu.dot_dimension_numbers<[1], [0], [0], [1], [0, 0, 1, 1], [], []>} : vector<16x32xf32>, vector<32x32xf32>, vector<16x32xf32> -> vector<16x32xf32>
    %125 = vector.broadcast %14 : vector<1x32xf32> to vector<16x32xf32>
    %126 = arith.addf %124, %125 : vector<16x32xf32>
    %127 = arith.addf %9, %126 : vector<16x32xf32>
    %cst_47 = arith.constant dense<0.000000e+00> : vector<16xf32>
    %128 = vector.multi_reduction <add>, %127, %cst_47 [1] : vector<16x32xf32> to vector<16xf32>
    %129 = vector.shape_cast %128 : vector<16xf32> to vector<16x1xf32>
    %cst_48 = arith.constant 3.200000e+01 : f32
    %130 = vector.broadcast %cst_48 : f32 to vector<16x1xf32>
    %131 = arith.divf %129, %130 : vector<16x1xf32>
    %132 = vector.broadcast %131 : vector<16x1xf32> to vector<16x32xf32>
    %133 = arith.subf %127, %132 : vector<16x32xf32>
    %134 = arith.mulf %133, %133 : vector<16x32xf32>
    %cst_49 = arith.constant dense<0.000000e+00> : vector<16xf32>
    %135 = vector.multi_reduction <add>, %134, %cst_49 [1] : vector<16x32xf32> to vector<16xf32>
    %136 = vector.shape_cast %135 : vector<16xf32> to vector<16x1xf32>
    %cst_50 = arith.constant 3.200000e+01 : f32
    %137 = vector.broadcast %cst_50 : f32 to vector<16x1xf32>
    %138 = arith.divf %136, %137 : vector<16x1xf32>
    %139 = vector.broadcast %131 : vector<16x1xf32> to vector<16x32xf32>
    %140 = arith.subf %127, %139 : vector<16x32xf32>
    %cst_51 = arith.constant 9.99999974E-6 : f32
    %141 = vector.broadcast %cst_51 : f32 to vector<16x1xf32>
    %142 = arith.addf %138, %141 : vector<16x1xf32>
    %143 = math.rsqrt %142 : vector<16x1xf32>
    %144 = vector.broadcast %143 : vector<16x1xf32> to vector<16x32xf32>
    %145 = arith.mulf %140, %144 : vector<16x32xf32>
    %146 = vector.broadcast %15 : vector<1x32xf32> to vector<16x32xf32>
    %147 = arith.mulf %145, %146 : vector<16x32xf32>
    %148 = vector.broadcast %16 : vector<1x32xf32> to vector<16x32xf32>
    %149 = arith.addf %147, %148 : vector<16x32xf32>
    %cst_52 = arith.constant dense<0.000000e+00> : vector<16x128xf32>
    %150 = tpu.matmul %149, %20, %cst_52 {dimension_numbers = #tpu.dot_dimension_numbers<[1], [0], [0], [1], [0, 0, 1, 1], [], []>} : vector<16x32xf32>, vector<32x128xf32>, vector<16x128xf32> -> vector<16x128xf32>
    %151 = vector.broadcast %17 : vector<1x128xf32> to vector<16x128xf32>
    %152 = arith.addf %150, %151 : vector<16x128xf32>
    %cst_53 = arith.constant 0.000000e+00 : f32
    %153 = vector.broadcast %cst_53 : f32 to vector<16x128xf32>
    %154 = arith.maximumf %152, %153 : vector<16x128xf32>
    %cst_54 = arith.constant dense<0.000000e+00> : vector<16x32xf32>
    %155 = tpu.matmul %154, %22, %cst_54 {dimension_numbers = #tpu.dot_dimension_numbers<[1], [0], [0], [1], [0, 0, 1, 1], [], []>} : vector<16x128xf32>, vector<128x32xf32>, vector<16x32xf32> -> vector<16x32xf32>
    %156 = arith.addf %127, %155 : vector<16x32xf32>
    %157 = vector.broadcast %18 : vector<1x32xf32> to vector<16x32xf32>
    %158 = arith.addf %156, %157 : vector<16x32xf32>
    %c24 = arith.constant 24 : index
    %c0_55 = arith.constant 0 : index
    %159 = vector.load %arg5[%c24, %c0_55] : memref<35x128xf32, #tpu.memory_space<vmem>>, vector<1x32xf32>
    %c25 = arith.constant 25 : index
    %c0_56 = arith.constant 0 : index
    %160 = vector.load %arg5[%c25, %c0_56] : memref<35x128xf32, #tpu.memory_space<vmem>>, vector<1x32xf32>
    %c26 = arith.constant 26 : index
    %c0_57 = arith.constant 0 : index
    %161 = vector.load %arg5[%c26, %c0_57] : memref<35x128xf32, #tpu.memory_space<vmem>>, vector<1x96xf32>
    %c27 = arith.constant 27 : index
    %c0_58 = arith.constant 0 : index
    %162 = vector.load %arg5[%c27, %c0_58] : memref<35x128xf32, #tpu.memory_space<vmem>>, vector<1x32xf32>
    %c28 = arith.constant 28 : index
    %c0_59 = arith.constant 0 : index
    %163 = vector.load %arg5[%c28, %c0_59] : memref<35x128xf32, #tpu.memory_space<vmem>>, vector<1x32xf32>
    %c29 = arith.constant 29 : index
    %c0_60 = arith.constant 0 : index
    %164 = vector.load %arg5[%c29, %c0_60] : memref<35x128xf32, #tpu.memory_space<vmem>>, vector<1x32xf32>
    %c30 = arith.constant 30 : index
    %c0_61 = arith.constant 0 : index
    %165 = vector.load %arg5[%c30, %c0_61] : memref<35x128xf32, #tpu.memory_space<vmem>>, vector<1x128xf32>
    %c31 = arith.constant 31 : index
    %c0_62 = arith.constant 0 : index
    %166 = vector.load %arg5[%c31, %c0_62] : memref<35x128xf32, #tpu.memory_space<vmem>>, vector<1x32xf32>
    %c32 = arith.constant 32 : index
    %c0_63 = arith.constant 0 : index
    %167 = vector.load %arg2[%c32, %c0_63] : memref<64x96xf32, #tpu.memory_space<vmem>>, vector<32x96xf32>
    %c32_64 = arith.constant 32 : index
    %c0_65 = arith.constant 0 : index
    %168 = vector.load %arg3[%c32_64, %c0_65] : memref<64x128xf32, #tpu.memory_space<vmem>>, vector<32x128xf32>
    %c240 = arith.constant 240 : index
    %c0_66 = arith.constant 0 : index
    %169 = vector.load %arg1[%c240, %c0_66] : memref<400x32xf32, #tpu.memory_space<vmem>>, vector<32x32xf32>
    %c272 = arith.constant 272 : index
    %c0_67 = arith.constant 0 : index
    %170 = vector.load %arg1[%c272, %c0_67] : memref<400x32xf32, #tpu.memory_space<vmem>>, vector<128x32xf32>
    %cst_68 = arith.constant dense<0.000000e+00> : vector<16xf32>
    %171 = vector.multi_reduction <add>, %158, %cst_68 [1] : vector<16x32xf32> to vector<16xf32>
    %172 = vector.shape_cast %171 : vector<16xf32> to vector<16x1xf32>
    %cst_69 = arith.constant 3.200000e+01 : f32
    %173 = vector.broadcast %cst_69 : f32 to vector<16x1xf32>
    %174 = arith.divf %172, %173 : vector<16x1xf32>
    %175 = vector.broadcast %174 : vector<16x1xf32> to vector<16x32xf32>
    %176 = arith.subf %158, %175 : vector<16x32xf32>
    %177 = arith.mulf %176, %176 : vector<16x32xf32>
    %cst_70 = arith.constant dense<0.000000e+00> : vector<16xf32>
    %178 = vector.multi_reduction <add>, %177, %cst_70 [1] : vector<16x32xf32> to vector<16xf32>
    %179 = vector.shape_cast %178 : vector<16xf32> to vector<16x1xf32>
    %cst_71 = arith.constant 3.200000e+01 : f32
    %180 = vector.broadcast %cst_71 : f32 to vector<16x1xf32>
    %181 = arith.divf %179, %180 : vector<16x1xf32>
    %182 = vector.broadcast %174 : vector<16x1xf32> to vector<16x32xf32>
    %183 = arith.subf %158, %182 : vector<16x32xf32>
    %cst_72 = arith.constant 9.99999974E-6 : f32
    %184 = vector.broadcast %cst_72 : f32 to vector<16x1xf32>
    %185 = arith.addf %181, %184 : vector<16x1xf32>
    %186 = math.rsqrt %185 : vector<16x1xf32>
    %187 = vector.broadcast %186 : vector<16x1xf32> to vector<16x32xf32>
    %188 = arith.mulf %183, %187 : vector<16x32xf32>
    %189 = vector.broadcast %159 : vector<1x32xf32> to vector<16x32xf32>
    %190 = arith.mulf %188, %189 : vector<16x32xf32>
    %191 = vector.broadcast %160 : vector<1x32xf32> to vector<16x32xf32>
    %192 = arith.addf %190, %191 : vector<16x32xf32>
    %cst_73 = arith.constant dense<0.000000e+00> : vector<16x96xf32>
    %193 = tpu.matmul %192, %167, %cst_73 {dimension_numbers = #tpu.dot_dimension_numbers<[1], [0], [0], [1], [0, 0, 1, 1], [], []>} : vector<16x32xf32>, vector<32x96xf32>, vector<16x96xf32> -> vector<16x96xf32>
    %194 = vector.broadcast %161 : vector<1x96xf32> to vector<16x96xf32>
    %195 = arith.addf %193, %194 : vector<16x96xf32>
    %196 = vector.extract_strided_slice %195 {offsets = [0, 0], sizes = [16, 32], strides = [1, 1]} : vector<16x96xf32> to vector<16x32xf32>
    %197 = vector.extract_strided_slice %195 {offsets = [0, 32], sizes = [16, 32], strides = [1, 1]} : vector<16x96xf32> to vector<16x32xf32>
    %198 = vector.extract_strided_slice %195 {offsets = [0, 64], sizes = [16, 32], strides = [1, 1]} : vector<16x96xf32> to vector<16x32xf32>
    %199 = vector.extract_strided_slice %196 {offsets = [0, 0], sizes = [16, 8], strides = [1, 1]} : vector<16x32xf32> to vector<16x8xf32>
    %200 = vector.extract_strided_slice %197 {offsets = [0, 0], sizes = [16, 8], strides = [1, 1]} : vector<16x32xf32> to vector<16x8xf32>
    %201 = vector.extract_strided_slice %198 {offsets = [0, 0], sizes = [16, 8], strides = [1, 1]} : vector<16x32xf32> to vector<16x8xf32>
    %cst_74 = arith.constant dense<0.000000e+00> : vector<16x16xf32>
    %202 = tpu.matmul %199, %200, %cst_74 {dimension_numbers = #tpu.dot_dimension_numbers<[1], [1], [0], [0], [0, 0, 1, 0], [], []>} : vector<16x8xf32>, vector<16x8xf32>, vector<16x16xf32> -> vector<16x16xf32>
    %cst_75 = arith.constant 0.353553385 : f32
    %203 = vector.broadcast %cst_75 : f32 to vector<16x16xf32>
    %204 = arith.mulf %202, %203 : vector<16x16xf32>
    %205 = arith.addf %204, %10 : vector<16x16xf32>
    %cst_76 = arith.constant dense<0xFF800000> : vector<16xf32>
    %206 = vector.multi_reduction <maximumf>, %205, %cst_76 [1] : vector<16x16xf32> to vector<16xf32>
    %207 = vector.shape_cast %206 : vector<16xf32> to vector<16x1xf32>
    %208 = vector.broadcast %207 : vector<16x1xf32> to vector<16x16xf32>
    %209 = arith.subf %205, %208 : vector<16x16xf32>
    %210 = math.exp %209 : vector<16x16xf32>
    %cst_77 = arith.constant dense<0.000000e+00> : vector<16xf32>
    %211 = vector.multi_reduction <add>, %210, %cst_77 [1] : vector<16x16xf32> to vector<16xf32>
    %212 = vector.shape_cast %211 : vector<16xf32> to vector<16x1xf32>
    %213 = tpu.reciprocal %212 {approx = true} : vector<16x1xf32> -> vector<16x1xf32>
    %214 = vector.broadcast %213 : vector<16x1xf32> to vector<16x16xf32>
    %215 = arith.mulf %210, %214 : vector<16x16xf32>
    %cst_78 = arith.constant dense<0.000000e+00> : vector<16x8xf32>
    %216 = tpu.matmul %215, %201, %cst_78 {dimension_numbers = #tpu.dot_dimension_numbers<[1], [0], [0], [1], [0, 0, 1, 1], [], []>} : vector<16x16xf32>, vector<16x8xf32>, vector<16x8xf32> -> vector<16x8xf32>
    %217 = vector.extract_strided_slice %196 {offsets = [0, 8], sizes = [16, 8], strides = [1, 1]} : vector<16x32xf32> to vector<16x8xf32>
    %218 = vector.extract_strided_slice %197 {offsets = [0, 8], sizes = [16, 8], strides = [1, 1]} : vector<16x32xf32> to vector<16x8xf32>
    %219 = vector.extract_strided_slice %198 {offsets = [0, 8], sizes = [16, 8], strides = [1, 1]} : vector<16x32xf32> to vector<16x8xf32>
    %cst_79 = arith.constant dense<0.000000e+00> : vector<16x16xf32>
    %220 = tpu.matmul %217, %218, %cst_79 {dimension_numbers = #tpu.dot_dimension_numbers<[1], [1], [0], [0], [0, 0, 1, 0], [], []>} : vector<16x8xf32>, vector<16x8xf32>, vector<16x16xf32> -> vector<16x16xf32>
    %cst_80 = arith.constant 0.353553385 : f32
    %221 = vector.broadcast %cst_80 : f32 to vector<16x16xf32>
    %222 = arith.mulf %220, %221 : vector<16x16xf32>
    %223 = arith.addf %222, %10 : vector<16x16xf32>
    %cst_81 = arith.constant dense<0xFF800000> : vector<16xf32>
    %224 = vector.multi_reduction <maximumf>, %223, %cst_81 [1] : vector<16x16xf32> to vector<16xf32>
    %225 = vector.shape_cast %224 : vector<16xf32> to vector<16x1xf32>
    %226 = vector.broadcast %225 : vector<16x1xf32> to vector<16x16xf32>
    %227 = arith.subf %223, %226 : vector<16x16xf32>
    %228 = math.exp %227 : vector<16x16xf32>
    %cst_82 = arith.constant dense<0.000000e+00> : vector<16xf32>
    %229 = vector.multi_reduction <add>, %228, %cst_82 [1] : vector<16x16xf32> to vector<16xf32>
    %230 = vector.shape_cast %229 : vector<16xf32> to vector<16x1xf32>
    %231 = tpu.reciprocal %230 {approx = true} : vector<16x1xf32> -> vector<16x1xf32>
    %232 = vector.broadcast %231 : vector<16x1xf32> to vector<16x16xf32>
    %233 = arith.mulf %228, %232 : vector<16x16xf32>
    %cst_83 = arith.constant dense<0.000000e+00> : vector<16x8xf32>
    %234 = tpu.matmul %233, %219, %cst_83 {dimension_numbers = #tpu.dot_dimension_numbers<[1], [0], [0], [1], [0, 0, 1, 1], [], []>} : vector<16x16xf32>, vector<16x8xf32>, vector<16x8xf32> -> vector<16x8xf32>
    %235 = vector.extract_strided_slice %196 {offsets = [0, 16], sizes = [16, 8], strides = [1, 1]} : vector<16x32xf32> to vector<16x8xf32>
    %236 = vector.extract_strided_slice %197 {offsets = [0, 16], sizes = [16, 8], strides = [1, 1]} : vector<16x32xf32> to vector<16x8xf32>
    %237 = vector.extract_strided_slice %198 {offsets = [0, 16], sizes = [16, 8], strides = [1, 1]} : vector<16x32xf32> to vector<16x8xf32>
    %cst_84 = arith.constant dense<0.000000e+00> : vector<16x16xf32>
    %238 = tpu.matmul %235, %236, %cst_84 {dimension_numbers = #tpu.dot_dimension_numbers<[1], [1], [0], [0], [0, 0, 1, 0], [], []>} : vector<16x8xf32>, vector<16x8xf32>, vector<16x16xf32> -> vector<16x16xf32>
    %cst_85 = arith.constant 0.353553385 : f32
    %239 = vector.broadcast %cst_85 : f32 to vector<16x16xf32>
    %240 = arith.mulf %238, %239 : vector<16x16xf32>
    %241 = arith.addf %240, %10 : vector<16x16xf32>
    %cst_86 = arith.constant dense<0xFF800000> : vector<16xf32>
    %242 = vector.multi_reduction <maximumf>, %241, %cst_86 [1] : vector<16x16xf32> to vector<16xf32>
    %243 = vector.shape_cast %242 : vector<16xf32> to vector<16x1xf32>
    %244 = vector.broadcast %243 : vector<16x1xf32> to vector<16x16xf32>
    %245 = arith.subf %241, %244 : vector<16x16xf32>
    %246 = math.exp %245 : vector<16x16xf32>
    %cst_87 = arith.constant dense<0.000000e+00> : vector<16xf32>
    %247 = vector.multi_reduction <add>, %246, %cst_87 [1] : vector<16x16xf32> to vector<16xf32>
    %248 = vector.shape_cast %247 : vector<16xf32> to vector<16x1xf32>
    %249 = tpu.reciprocal %248 {approx = true} : vector<16x1xf32> -> vector<16x1xf32>
    %250 = vector.broadcast %249 : vector<16x1xf32> to vector<16x16xf32>
    %251 = arith.mulf %246, %250 : vector<16x16xf32>
    %cst_88 = arith.constant dense<0.000000e+00> : vector<16x8xf32>
    %252 = tpu.matmul %251, %237, %cst_88 {dimension_numbers = #tpu.dot_dimension_numbers<[1], [0], [0], [1], [0, 0, 1, 1], [], []>} : vector<16x16xf32>, vector<16x8xf32>, vector<16x8xf32> -> vector<16x8xf32>
    %253 = vector.extract_strided_slice %196 {offsets = [0, 24], sizes = [16, 8], strides = [1, 1]} : vector<16x32xf32> to vector<16x8xf32>
    %254 = vector.extract_strided_slice %197 {offsets = [0, 24], sizes = [16, 8], strides = [1, 1]} : vector<16x32xf32> to vector<16x8xf32>
    %255 = vector.extract_strided_slice %198 {offsets = [0, 24], sizes = [16, 8], strides = [1, 1]} : vector<16x32xf32> to vector<16x8xf32>
    %cst_89 = arith.constant dense<0.000000e+00> : vector<16x16xf32>
    %256 = tpu.matmul %253, %254, %cst_89 {dimension_numbers = #tpu.dot_dimension_numbers<[1], [1], [0], [0], [0, 0, 1, 0], [], []>} : vector<16x8xf32>, vector<16x8xf32>, vector<16x16xf32> -> vector<16x16xf32>
    %cst_90 = arith.constant 0.353553385 : f32
    %257 = vector.broadcast %cst_90 : f32 to vector<16x16xf32>
    %258 = arith.mulf %256, %257 : vector<16x16xf32>
    %259 = arith.addf %258, %10 : vector<16x16xf32>
    %cst_91 = arith.constant dense<0xFF800000> : vector<16xf32>
    %260 = vector.multi_reduction <maximumf>, %259, %cst_91 [1] : vector<16x16xf32> to vector<16xf32>
    %261 = vector.shape_cast %260 : vector<16xf32> to vector<16x1xf32>
    %262 = vector.broadcast %261 : vector<16x1xf32> to vector<16x16xf32>
    %263 = arith.subf %259, %262 : vector<16x16xf32>
    %264 = math.exp %263 : vector<16x16xf32>
    %cst_92 = arith.constant dense<0.000000e+00> : vector<16xf32>
    %265 = vector.multi_reduction <add>, %264, %cst_92 [1] : vector<16x16xf32> to vector<16xf32>
    %266 = vector.shape_cast %265 : vector<16xf32> to vector<16x1xf32>
    %267 = tpu.reciprocal %266 {approx = true} : vector<16x1xf32> -> vector<16x1xf32>
    %268 = vector.broadcast %267 : vector<16x1xf32> to vector<16x16xf32>
    %269 = arith.mulf %264, %268 : vector<16x16xf32>
    %cst_93 = arith.constant dense<0.000000e+00> : vector<16x8xf32>
    %270 = tpu.matmul %269, %255, %cst_93 {dimension_numbers = #tpu.dot_dimension_numbers<[1], [0], [0], [1], [0, 0, 1, 1], [], []>} : vector<16x16xf32>, vector<16x8xf32>, vector<16x8xf32> -> vector<16x8xf32>
    %271 = tpu.concatenate %216, %234, %252, %270 in 1 : vector<16x8xf32>, vector<16x8xf32>, vector<16x8xf32>, vector<16x8xf32> -> vector<16x32xf32>
    %cst_94 = arith.constant dense<0.000000e+00> : vector<16x32xf32>
    %272 = tpu.matmul %271, %169, %cst_94 {dimension_numbers = #tpu.dot_dimension_numbers<[1], [0], [0], [1], [0, 0, 1, 1], [], []>} : vector<16x32xf32>, vector<32x32xf32>, vector<16x32xf32> -> vector<16x32xf32>
    %273 = vector.broadcast %162 : vector<1x32xf32> to vector<16x32xf32>
    %274 = arith.addf %272, %273 : vector<16x32xf32>
    %275 = arith.addf %158, %274 : vector<16x32xf32>
    %cst_95 = arith.constant dense<0.000000e+00> : vector<16xf32>
    %276 = vector.multi_reduction <add>, %275, %cst_95 [1] : vector<16x32xf32> to vector<16xf32>
    %277 = vector.shape_cast %276 : vector<16xf32> to vector<16x1xf32>
    %cst_96 = arith.constant 3.200000e+01 : f32
    %278 = vector.broadcast %cst_96 : f32 to vector<16x1xf32>
    %279 = arith.divf %277, %278 : vector<16x1xf32>
    %280 = vector.broadcast %279 : vector<16x1xf32> to vector<16x32xf32>
    %281 = arith.subf %275, %280 : vector<16x32xf32>
    %282 = arith.mulf %281, %281 : vector<16x32xf32>
    %cst_97 = arith.constant dense<0.000000e+00> : vector<16xf32>
    %283 = vector.multi_reduction <add>, %282, %cst_97 [1] : vector<16x32xf32> to vector<16xf32>
    %284 = vector.shape_cast %283 : vector<16xf32> to vector<16x1xf32>
    %cst_98 = arith.constant 3.200000e+01 : f32
    %285 = vector.broadcast %cst_98 : f32 to vector<16x1xf32>
    %286 = arith.divf %284, %285 : vector<16x1xf32>
    %287 = vector.broadcast %279 : vector<16x1xf32> to vector<16x32xf32>
    %288 = arith.subf %275, %287 : vector<16x32xf32>
    %cst_99 = arith.constant 9.99999974E-6 : f32
    %289 = vector.broadcast %cst_99 : f32 to vector<16x1xf32>
    %290 = arith.addf %286, %289 : vector<16x1xf32>
    %291 = math.rsqrt %290 : vector<16x1xf32>
    %292 = vector.broadcast %291 : vector<16x1xf32> to vector<16x32xf32>
    %293 = arith.mulf %288, %292 : vector<16x32xf32>
    %294 = vector.broadcast %163 : vector<1x32xf32> to vector<16x32xf32>
    %295 = arith.mulf %293, %294 : vector<16x32xf32>
    %296 = vector.broadcast %164 : vector<1x32xf32> to vector<16x32xf32>
    %297 = arith.addf %295, %296 : vector<16x32xf32>
    %cst_100 = arith.constant dense<0.000000e+00> : vector<16x128xf32>
    %298 = tpu.matmul %297, %168, %cst_100 {dimension_numbers = #tpu.dot_dimension_numbers<[1], [0], [0], [1], [0, 0, 1, 1], [], []>} : vector<16x32xf32>, vector<32x128xf32>, vector<16x128xf32> -> vector<16x128xf32>
    %299 = vector.broadcast %165 : vector<1x128xf32> to vector<16x128xf32>
    %300 = arith.addf %298, %299 : vector<16x128xf32>
    %cst_101 = arith.constant 0.000000e+00 : f32
    %301 = vector.broadcast %cst_101 : f32 to vector<16x128xf32>
    %302 = arith.maximumf %300, %301 : vector<16x128xf32>
    %cst_102 = arith.constant dense<0.000000e+00> : vector<16x32xf32>
    %303 = tpu.matmul %302, %170, %cst_102 {dimension_numbers = #tpu.dot_dimension_numbers<[1], [0], [0], [1], [0, 0, 1, 1], [], []>} : vector<16x128xf32>, vector<128x32xf32>, vector<16x32xf32> -> vector<16x32xf32>
    %304 = arith.addf %275, %303 : vector<16x32xf32>
    %305 = vector.broadcast %166 : vector<1x32xf32> to vector<16x32xf32>
    %306 = arith.addf %304, %305 : vector<16x32xf32>
    %c32_103 = arith.constant 32 : index
    %c0_104 = arith.constant 0 : index
    %307 = vector.load %arg5[%c32_103, %c0_104] : memref<35x128xf32, #tpu.memory_space<vmem>>, vector<1x32xf32>
    %c33 = arith.constant 33 : index
    %c0_105 = arith.constant 0 : index
    %308 = vector.load %arg5[%c33, %c0_105] : memref<35x128xf32, #tpu.memory_space<vmem>>, vector<1x32xf32>
    %c34 = arith.constant 34 : index
    %c0_106 = arith.constant 0 : index
    %309 = vector.load %arg5[%c34, %c0_106] : memref<35x128xf32, #tpu.memory_space<vmem>>, vector<1x64xf32>
    %cst_107 = arith.constant dense<0.000000e+00> : vector<16xf32>
    %310 = vector.multi_reduction <add>, %306, %cst_107 [1] : vector<16x32xf32> to vector<16xf32>
    %311 = vector.shape_cast %310 : vector<16xf32> to vector<16x1xf32>
    %cst_108 = arith.constant 3.200000e+01 : f32
    %312 = vector.broadcast %cst_108 : f32 to vector<16x1xf32>
    %313 = arith.divf %311, %312 : vector<16x1xf32>
    %314 = vector.broadcast %313 : vector<16x1xf32> to vector<16x32xf32>
    %315 = arith.subf %306, %314 : vector<16x32xf32>
    %316 = arith.mulf %315, %315 : vector<16x32xf32>
    %cst_109 = arith.constant dense<0.000000e+00> : vector<16xf32>
    %317 = vector.multi_reduction <add>, %316, %cst_109 [1] : vector<16x32xf32> to vector<16xf32>
    %318 = vector.shape_cast %317 : vector<16xf32> to vector<16x1xf32>
    %cst_110 = arith.constant 3.200000e+01 : f32
    %319 = vector.broadcast %cst_110 : f32 to vector<16x1xf32>
    %320 = arith.divf %318, %319 : vector<16x1xf32>
    %321 = vector.broadcast %313 : vector<16x1xf32> to vector<16x32xf32>
    %322 = arith.subf %306, %321 : vector<16x32xf32>
    %cst_111 = arith.constant 9.99999974E-6 : f32
    %323 = vector.broadcast %cst_111 : f32 to vector<16x1xf32>
    %324 = arith.addf %320, %323 : vector<16x1xf32>
    %325 = math.rsqrt %324 : vector<16x1xf32>
    %326 = vector.broadcast %325 : vector<16x1xf32> to vector<16x32xf32>
    %327 = arith.mulf %322, %326 : vector<16x32xf32>
    %328 = vector.broadcast %307 : vector<1x32xf32> to vector<16x32xf32>
    %329 = arith.mulf %327, %328 : vector<16x32xf32>
    %330 = vector.broadcast %308 : vector<1x32xf32> to vector<16x32xf32>
    %331 = arith.addf %329, %330 : vector<16x32xf32>
    %c0_112 = arith.constant 0 : index
    %c0_113 = arith.constant 0 : index
    %332 = vector.load %arg4[%c0_112, %c0_113] : memref<32x64xf32, #tpu.memory_space<vmem>>, vector<32x64xf32>
    %cst_114 = arith.constant dense<0.000000e+00> : vector<16x64xf32>
    %333 = tpu.matmul %331, %332, %cst_114 {dimension_numbers = #tpu.dot_dimension_numbers<[1], [0], [0], [1], [0, 0, 1, 1], [], []>} : vector<16x32xf32>, vector<32x64xf32>, vector<16x64xf32> -> vector<16x64xf32>
    %334 = vector.broadcast %309 : vector<1x64xf32> to vector<16x64xf32>
    %335 = arith.addf %333, %334 : vector<16x64xf32>
    %c0_115 = arith.constant 0 : index
    %c0_116 = arith.constant 0 : index
    %336 = vector.load %arg6[%c0_115, %c0_116] : memref<16x64xf32, #tpu.memory_space<vmem>>, vector<16x64xf32>
    tpu.vector_store %arg6[%c0_115, %c0_116], %335 {strides = array<i32>} : memref<16x64xf32, #tpu.memory_space<vmem>>, vector<16x64xf32>,
    return
  }
}

</mosaic_0001>

<bundles_post_ra>
// kernel: tpu_custom_call.1
= control target key start
LH: loop header
LB: loop body
LE: loop exit
PB: predicated region body
PF: predicated region fallthrough
CT: control target
= control target key end

     0   :  { %v1833_v2 = vmov 0   ;;  %s2502_s0 = inlined_call_operand.vmem [shape: s32[16,1], index: 0, kind: input, shape index: {}]   ;;  %s2503_s1 = inlined_call_operand.vmem [shape: f32[400,32], index: 1, kind: input, shape index: {}]   ;;  %s2504_s2 = inlined_call_operand.vmem [shape: f32[64,96], index: 2, kind: input, shape index: {}]   ;;  %s2505_s3 = inlined_call_operand.vmem [shape: f32[64,128], index: 3, kind: input, shape index: {}]   ;;  %s2506_s4 = inlined_call_operand.vmem [shape: f32[32,64], index: 4, kind: input, shape index: {}]   ;;  %s2507_s5 = inlined_call_operand.vmem [shape: f32[35,128], index: 5, kind: input, shape index: {}]   ;;  %s2508_s6 = inlined_call_operand.hbm [shape: f32[16,64], index: 6, kind: output, shape index: {}]  }
   0x1   :  { %v26_v0 = vld [vmem:[%s2502_s0] sm:$0xff]  ;;  %v47_v1 = vld [vmem:[%s2503_s1 + $0x38] sm:$0xff]  ;;  %1659 = vset.pattern.permute.xlu0 %v1833_v2  ;;  %v46_v3 = vld [vmem:[%s2503_s1 + $0x30] sm:$0xff] }
   0x2   :  { %65 = vmatpush.msra.mxu0 %v47_v1  ;;  %29 = vperm.xlu0 %1659, %v26_v0   ;;  %v45_v4 = vld [vmem:[%s2503_s1 + $0x28] sm:$0xff]  ;;  %v44_v5 = vld [vmem:[%s2503_s1 + $0x20] sm:$0xff]  ;;  %v43_v6 = vld [vmem:[%s2503_s1 + $0x18] sm:$0xff] }
   0x3   :  { %v27_v7 = vld [vmem:[%s2502_s0 + $0x8] sm:$0xff]  ;;  %v42_v8 = vld [vmem:[%s2503_s1 + $0x10] sm:$0xff] }
   0x4   :  { %66 = vmatpush.msra.mxu0 %v46_v3 }
   0x6   :  { %67 = vmatpush.msra.mxu0 %v45_v4 }
   0x8   :  { %68 = vmatpush.msra.mxu0 %v44_v5 }
   0xa   :  { %69 = vmatpush.msra.mxu0 %v43_v6 }
   0xb   :  { %11 = vsyncpa [#allocation3], 0  ;;  %32 = vperm.xlu0 %1659, %v27_v7   ;;  %v41_v9 = vld [vmem:[%s2503_s1 + $0x8] sm:$0xff]  ;;  %v40_v10 = vld [vmem:[%s2503_s1] sm:$0xff]  ;;  %v24_v11 = vlaneseq  ;;  %vm50_vm0 = vcmask 523264   ;;  %v1834_v14 = vmov 0.0  }
   0xc   :  { %70 = vmatpush.msra.mxu0 %v42_v8  ;;  %v48_v18 = vld [vmem:[%s2503_s1 + $0x40] sm:$0xff]  ;;  %vm118_vm3 = vcmask 261120   ;;  %v49_v22 = vld [vmem:[%s2503_s1 + $0x48] sm:$0xff]  ;;  %v1835_v26 = vmov 32.0   ;;  %v93_v43 = vld [vmem:[%s2504_s2 + $0x18] sm:$0xff]  ;;  %s1836_s10 = smov 96  }
   0xd   :  { %v25_v12 = vand.u32 127, %v24_v11  ;;  %1719 = vrcp.f32 %v1835_v26  ;;  %v92_v44 = vld [vmem:[%s2504_s2 + $0x10] sm:$0xff]  ;;  %v91_v45 = vld [vmem:[%s2504_s2 + $0x8] sm:$0xff]  ;;  %v90_v46 = vld [vmem:[%s2504_s2] sm:$0xff]  ;;  %vm212_vm11 = vcmask 64512   ;;  %vm248_vm12 = vcmask 130048  }
   0xe   :  { %71 = vmatpush.msra.mxu0 %v41_v9  ;;  %v1700_v61 = vld [vmem:[%s2507_s5 + $0x10] ss:$0 sm:$0xff]  ;;  %v1701_v1 = vld [vmem:[%s2507_s5 + $0x11] ss:$0 sm:$0xff]  ;;  %v1702_v11 = vld [vmem:[%s2507_s5 + $0x12] ss:$0 sm:$0xff] }
   0xf   :  { %v1990_v26 = vld [vmem:[%s2507_s5 + $0x8] sm:$0xff]  ;;  %s1837_s15 = smov 64   ;;  %s1838_s16 = smov 120   ;;  %vm634_vm13 = vcmask 195584  }
  0x10   :  { %72 = vmatpush.msra.mxu0 %v40_v10  ;;  %s1839_s0 = smov 88   ;;  %s1840_s17 = smov 112  }
  0x11   :  { %s1841_s18 = smov 72   ;;  %s1842_s19 = smov 80  }
  0x12   :  { %195 = vmatpush.msrb.mxu0 %v93_v43  ;;  %s1843_s20 = smov 104   ;;  %s1844_s21 = smov 56  }
  0x13   :  { %v1720_v27 = vpop.eup %1719  ;;  %s1845_s22 = smov 40   ;;  %s1846_s23 = smov 48  }
  0x14   :  { %v126_v28 = vmul.f32 32.0, %v1720_v27  ;;  %vm130_vm4 = vweird.f32 %v1720_v27  ;;  %196 = vmatpush.msrb.mxu0 %v92_v44  ;;  %s1847_s24 = smov 8   ;;  %s1848_s25 = smov 16  }
  0x15   :  { %s1849_s26 = smov 24   ;;  %s1850_s29 = smov [#allocation2]  }
  0x16   :  { %v127_v29 = vsub.f32 1.0, %v126_v28  ;;  %197 = vmatpush.msrb.mxu0 %v91_v45  ;;  %s1558_s30 = sshll.u32 %s1850_s29, 4  ;;  %s1559_s30 = int_to_ptr.vmem [resolvable:$true] %s1558_s30 }
  0x18   :  { %v128_v30 = vmul.f32 %v1720_v27, %v127_v29  ;;  %198 = vmatpush.msrb.mxu0 %v90_v46 }
  0x1a   :  { %v129_v31 = vadd.f32 %v1720_v27, %v128_v30 }
  0x1c   :  { %v1933_v32 = vsel %vm130_vm4, %v1720_v27, %v129_v31 }
  0x74   :  { %v30_v13 = vpop.permute.xlu0 %29 }
  0x75   :  { %vm34_vm1 = vcmp.eq.s32.totalorder %v25_v12, %v30_v13 }
  0x76   :  { %v1572_v15 = vsel %vm34_vm1, 1.0, %v1834_v14 }
  0x77   :  { %1574 = vmatmul.msk.f32.vlgmr.msra.gmra.mxu0 %vm50_vm0, %v1572_v15 }
  0x7d   :  { %v33_v16 = vpop.permute.xlu0 %32 }
  0x7e   :  { %vm35_vm2 = vcmp.eq.s32.totalorder %v25_v12, %v33_v16 }
  0x7f   :  { %v1573_v17 = vsel %vm35_vm2, 1.0, %v1834_v14 }
  0x80   :  { %1575 = vmatmul.msk.f32.gmra.mxu0 %vm50_vm0, %v1573_v17 }
  0xf4   :  { %v74_v19 = vpop.f32.mrf.mxu0 }
  0xf5   :  { %v1922_v20 = vadd.f32 %v74_v19, %v48_v18  ;;  %v1983_v19 = vld [vmem:[%s2507_s5] sm:$0xff] }
  0xf7   :  { %v119_v21 = vsel %vm118_vm3, %v1922_v20, 0.0 }
  0xf8   :  { %120 = vadd.xlane.f32.xlu1 %v119_v21 }
  0xfd   :  { %v77_v23 = vpop.f32.mrf.mxu0 }
  0xfe   :  { %v1929_v24 = vadd.f32 %v77_v23, %v49_v22 }
 0x100   :  { %v122_v25 = vsel %vm118_vm3, %v1929_v24, 0.0 }
 0x101   :  { %123 = vadd.xlane.f32.xlu1 %v122_v25 }
 0x16b   :  { %v121_v33 = vpop.xlane.xlu1 %120 }
 0x16c   :  { %v132_v34 = vmul.f32 %v1933_v32, %v121_v33 }
 0x16e   :  { %v134_v35 = vsub.f32 %v1922_v20, %v132_v34 }
 0x170   :  { %v136_v36 = vmul.f32 %v134_v35, %v134_v35 }
 0x172   :  { %v138_v37 = vsel %vm118_vm3, %v136_v36, 0.0 }
 0x173   :  { %139 = vadd.xlane.f32.xlu2 %v138_v37 }
 0x174   :  { %v124_v38 = vpop.xlane.xlu1 %123 }
 0x175   :  { %v133_v39 = vmul.f32 %v1933_v32, %v124_v38 }
 0x177   :  { %v135_v40 = vsub.f32 %v1929_v24, %v133_v39 }
 0x179   :  { %v137_v41 = vmul.f32 %v135_v40, %v135_v40 }
 0x17b   :  { %v141_v42 = vsel %vm118_vm3, %v137_v41, 0.0 }
 0x17c   :  { %142 = vadd.xlane.f32.xlu2 %v141_v42 }
 0x1e6   :  { %v140_v47 = vpop.xlane.xlu2 %139 }
 0x1e7   :  { %v144_v48 = vmul.f32 %v140_v47, %v1933_v32 }
 0x1e9   :  { %v146_v49 = vadd.f32 1e-05, %v144_v48 }
 0x1eb   :  { %1721 = vrsqrt.f32 %v146_v49  ;;  %vm154_vm6 = vweird.f32 %v146_v49 }
 0x1ef   :  { %v143_v50 = vpop.xlane.xlu2 %142 }
 0x1f0   :  { %v145_v51 = vmul.f32 %v143_v50, %v1933_v32 }
 0x1f1   :  { %v1722_v52 = vpop.eup %1721 }
 0x1f2   :  { %v147_v53 = vadd.f32 1e-05, %v145_v51  ;;  %v149_v54 = vmul.f32 %v1722_v52, %v146_v49  ;;  %vm155_vm5 = vweird.f32 %v1722_v52 }
 0x1f3   :  { %vm156_vm7 = vmor %vm154_vm6, %vm155_vm5 }
 0x1f4   :  { %1723 = vrsqrt.f32 %v147_v53  ;;  %v150_v55 = vmul.f32 %v1722_v52, %v149_v54  ;;  %vm164_vm9 = vweird.f32 %v147_v53 }
 0x1f6   :  { %v151_v56 = vmul.f32 0.5, %v150_v55 }
 0x1f8   :  { %v152_v57 = vsub.f32 1.5, %v151_v56 }
 0x1fa   :  { %v1724_v58 = vpop.eup %1723  ;;  %v153_v59 = vmul.f32 %v1722_v52, %v152_v57 }
 0x1fb   :  { %v159_v60 = vmul.f32 %v1724_v58, %v147_v53  ;;  %vm165_vm8 = vweird.f32 %v1724_v58 }
 0x1fc   :  { %v157_v62 = vsel %vm156_vm7, %v1722_v52, %v153_v59  ;;  %vm166_vm10 = vmor %vm164_vm9, %vm165_vm8 }
 0x1fd   :  { %v160_v63 = vmul.f32 %v1724_v58, %v159_v60  ;;  %v168_v0 = vmul.f32 %v157_v62, %v134_v35 }
 0x1ff   :  { %v161_v2 = vmul.f32 0.5, %v160_v63  ;;  %v171_v3 = vmul.f32 %v1700_v61, %v168_v0 }
 0x201   :  { %v162_v4 = vsub.f32 1.5, %v161_v2  ;;  %v174_v5 = vadd.f32 %v1701_v1, %v171_v3 }
 0x203   :  { %v163_v6 = vmul.f32 %v1724_v58, %v162_v4  ;;  %1576 = vmatmul.msk.f32.vlgmr.msrb.gmra.mxu0 %vm118_vm3, %v174_v5 }
 0x205   :  { %v167_v7 = vsel %vm166_vm10, %v1724_v58, %v163_v6 }
 0x206   :  { %v169_v8 = vmul.f32 %v167_v7, %v135_v40 }
 0x208   :  { %v172_v9 = vmul.f32 %v1700_v61, %v169_v8 }
 0x20a   :  { %v175_v10 = vadd.f32 %v1701_v1, %v172_v9 }
 0x20c   :  { %1577 = vmatmul.msk.f32.gmra.mxu0 %vm118_vm3, %v175_v10 }
 0x280   :  { %v200_v12 = vpop.f32.mrf.mxu0 }
 0x281   :  { %v1966_v13 = vadd.f32 %v1702_v11, %v200_v12 }
 0x283   :  { %208 = vrot.lane.b32.xlu1 %v1966_v13, %s1836_s10 }
 0x289   :  { %v203_v14 = vpop.f32.mrf.mxu0 }
 0x28a   :  { %v1970_v15 = vadd.f32 %v1702_v11, %v203_v14 }
 0x28c   :  { %210 = vrot.lane.b32.xlu0 %v1970_v15, %s1836_s10  ;;  %v1996_v30 = vpack.i.bf16 %v1966_v13, %v1970_v15 }
 0x2f5   :  { %v209_v17 = vpop.permute.xlu1 %208 }
 0x2fe   :  { %v211_v16 = vpop.permute.xlu0 %210 }
 0x2ff   :  { %1578 = vmatpush.xpose.msk.msra.mxu2 %vm212_vm11, %v211_v16 }
 0x303   :  { %1579 = vmatpush.xpose.msk.msra.mxu2 %vm212_vm11, %v209_v17 }
 0x306   :  { %1580 = vmatmul.msk.f32.vlgmr.msra.gmra.mxu2 %vm212_vm11, %v1966_v13 }
 0x30e   :  { %1581 = vmatmul.msk.f32.gmra.mxu2 %vm212_vm11, %v1970_v15 }
 0x389   :  { %v238_v18 = vpop.f32.mrf.mxu2 }
 0x38a   :  { %v244_v21 = vmul.f32 0.35355338, %v238_v18 }
 0x38c   :  { %v246_v22 = vadd.f32 %v244_v21, %v1983_v19 }
 0x38e   :  { %v249_v23 = vsel %vm248_vm12, %v246_v22, -inf }
 0x38f   :  { %250 = vmax.xlane.f32.xlu2 %v249_v23 }
 0x391   :  { %v241_v25 = vpop.f32.mrf.mxu2 }
 0x392   :  { %v245_v27 = vmul.f32 0.35355338, %v241_v25 }
 0x394   :  { %v247_v28 = vadd.f32 %v245_v27, %v1990_v26 }
 0x396   :  { %v252_v29 = vsel %vm248_vm12, %v247_v28, -inf }
 0x397   :  { %253 = vmax.xlane.f32.xlu0 %v252_v29 }
 0x3a7   :  { %1661 = vrot.lane.b32.xlu2 %v1996_v30, %s1837_s15 }
 0x3ab   :  { %306 = vrot.lane.b32.xlu0 %v1966_v13, %s1838_s16 }
 0x3af   :  { %312 = vrot.lane.b32.xlu2 %v1970_v15, %s1839_s0 }
 0x3b3   :  { %406 = vrot.lane.b32.xlu0 %v1966_v13, %s1840_s17 }
 0x3b7   :  { %310 = vrot.lane.b32.xlu2 %v1966_v13, %s1839_s0 }
 0x3bb   :  { %512 = vrot.lane.b32.xlu0 %v1970_v15, %s1841_s18 }
 0x3bf   :  { %412 = vrot.lane.b32.xlu2 %v1970_v15, %s1842_s19 }
 0x3c3   :  { %506 = vrot.lane.b32.xlu0 %v1966_v13, %s1843_s20 }
 0x3c7   :  { %410 = vrot.lane.b32.xlu2 %v1966_v13, %s1842_s19 }
 0x402   :  { %v251_v31 = vpop.xlane.xlu2 %250 }
 0x403   :  { %v255_v33 = vsub.f32 %v246_v22, %v251_v31 }
 0x405   :  { %v257_v34 = vmul.f32 1.442695, %v255_v33 }
 0x407   :  { %1725 = vpow2.f32 %v257_v34 }
 0x40a   :  { %v1662_v35 = vpop.permute.xlu2 %1661  ;;  %v254_v36 = vpop.xlane.xlu0 %253 }
 0x40b   :  { %v256_v37 = vsub.f32 %v247_v28, %v254_v36  ;;  %v1663_v38 = vunpack.i.l.bf16 %v1662_v35  ;;  %v1664_v41 = vunpack.i.h.bf16 %v1662_v35 }
 0x40d   :  { %v1726_v39 = vpop.eup %1725  ;;  %v259_v40 = vmul.f32 1.442695, %v256_v37  ;;  %297 = vmatpush.msra.mxu3 %v1663_v38 }
 0x40e   :  { %v261_v42 = vsel %vm248_vm12, %v1726_v39, 0.0 }
 0x40f   :  { %1727 = vpow2.f32 %v259_v40  ;;  %262 = vadd.xlane.f32.xlu2 %v261_v42  ;;  %298 = vmatpush.msra.mxu3 %v1664_v41 }
 0x412   :  { %v313_v43 = vpop.permute.xlu2 %312 }
 0x413   :  { %1584 = vmatpush.xpose.msk.msrb.mxu3 %vm212_vm11, %v313_v43 }
 0x415   :  { %v1728_v44 = vpop.eup %1727 }
 0x416   :  { %v264_v45 = vsel %vm248_vm12, %v1728_v44, 0.0 }
 0x417   :  { %265 = vadd.xlane.f32.xlu1 %v264_v45 }
 0x41a   :  { %v311_v46 = vpop.permute.xlu2 %310 }
 0x41b   :  { %1585 = vmatpush.xpose.msk.msrb.mxu3 %vm212_vm11, %v311_v46 }
 0x41d   :  { %v307_v48 = vpop.permute.xlu0 %306 }
 0x422   :  { %v413_v47 = vpop.permute.xlu2 %412 }
 0x423   :  { %1590 = vmatpush.xpose.msk.msrb.mxu2 %vm212_vm11, %v413_v47 }
 0x425   :  { %v407_v50 = vpop.permute.xlu0 %406 }
 0x427   :  { %408 = vrot.lane.b32.xlu2 %v1970_v15, %s1840_s17 }
 0x42a   :  { %v411_v49 = vpop.permute.xlu2 %410 }
 0x42b   :  { %1591 = vmatpush.xpose.msk.msrb.mxu2 %vm212_vm11, %v411_v49 }
 0x42d   :  { %v513_v56 = vpop.permute.xlu0 %512 }
 0x42e   :  { %1592 = vmatmul.msk.f32.vlgmr.msrb.gmra.mxu2 %vm212_vm11, %v407_v50 }
 0x42f   :  { %510 = vrot.lane.b32.xlu2 %v1966_v13, %s1841_s18 }
 0x430   :  { %308 = vrot.lane.b32.xlu1 %v1970_v15, %s1838_s16 }
 0x435   :  { %v507_v61 = vpop.permute.xlu0 %506 }
 0x437   :  { %508 = vrot.lane.b32.xlu2 %v1970_v15, %s1843_s20 }
 0x482   :  { %v263_v51 = vpop.xlane.xlu2 %262 }
 0x483   :  { %1729 = vrcp.f32 %v263_v51 }
 0x489   :  { %v1730_v52 = vpop.eup %1729 }
 0x48a   :  { %v409_v53 = vpop.permute.xlu2 %408  ;;  %v266_v54 = vpop.xlane.xlu1 %265  ;;  %v269_v55 = vmul.f32 %v1730_v52, %v1726_v39 }
 0x48b   :  { %1731 = vrcp.f32 %v266_v54  ;;  %1593 = vmatmul.msk.f32.gmra.mxu2 %vm212_vm11, %v409_v53 }
 0x48c   :  { %1582 = vmatmul.msk.f32.vlgmr.msra.gmra.mxu3 %vm248_vm12, %v269_v55 }
 0x48d   :  { %1596 = vmatpush.xpose.msk.msra.mxu3 %vm212_vm11, %v513_v56 }
 0x491   :  { %v1732_v57 = vpop.eup %1731 }
 0x492   :  { %v511_v58 = vpop.permute.xlu2 %510  ;;  %v270_v59 = vmul.f32 %v1732_v57, %v1728_v44 }
 0x493   :  { %1597 = vmatpush.xpose.msk.msra.mxu3 %vm212_vm11, %v511_v58 }
 0x494   :  { %1583 = vmatmul.msk.f32.gmra.mxu3 %vm248_vm12, %v270_v59 }
 0x49a   :  { %v509_v62 = vpop.permute.xlu2 %508 }
 0x49c   :  { %1586 = vmatmul.msk.f32.vlgmr.msrb.gmra.mxu3 %vm212_vm11, %v307_v48 }
 0x4a2   :  { %v309_v60 = vpop.permute.xlu1 %308 }
 0x4a4   :  { %1587 = vmatmul.msk.f32.gmra.mxu3 %vm212_vm11, %v309_v60 }
 0x4ac   :  { %1598 = vmatmul.msk.f32.vlgmr.msra.gmra.mxu3 %vm212_vm11, %v507_v61 }
 0x4b1   :  { %v439_v63 = vpop.f32.mrf.mxu2 }
 0x4b2   :  { %v445_v9 = vmul.f32 0.35355338, %v439_v63 }
 0x4b4   :  { %1599 = vmatmul.msk.f32.gmra.mxu3 %vm212_vm11, %v509_v62  ;;  %v447_v13 = vadd.f32 %v445_v9, %v1983_v19 }
 0x4b6   :  { %v449_v16 = vsel %vm248_vm12, %v447_v13, -inf }
 0x50e   :  { %v442_v0 = vpop.f32.mrf.mxu2 }
 0x50f   :  { %v446_v1 = vmul.f32 0.35355338, %v442_v0  ;;  %v2040_v2 = vpop.f32.mrf.mxu3 }
 0x511   :  { %v448_v3 = vadd.f32 %v446_v1, %v1990_v26 }
 0x513   :  { %v452_v4 = vsel %vm248_vm12, %v448_v3, -inf }
 0x514   :  { %453 = vmax.xlane.f32.xlu2 %v452_v4 }
 0x517   :  { %v2044_v5 = vpop.f32.mrf.mxu3 }
 0x51f   :  { %v339_v6 = vpop.f32.mrf.mxu3 }
 0x520   :  { %v345_v7 = vmul.f32 0.35355338, %v339_v6 }
 0x522   :  { %v347_v8 = vadd.f32 %v345_v7, %v1983_v19 }
 0x524   :  { %v349_v10 = vsel %vm248_vm12, %v347_v8, -inf }
 0x525   :  { %350 = vmax.xlane.f32.xlu1 %v349_v10 }
 0x527   :  { %v342_v11 = vpop.f32.mrf.mxu3 }
 0x528   :  { %v346_v12 = vmul.f32 0.35355338, %v342_v11 }
 0x52a   :  { %v348_v14 = vadd.f32 %v346_v12, %v1990_v26 }
 0x52c   :  { %v352_v15 = vsel %vm248_vm12, %v348_v14, -inf }
 0x52d   :  { %353 = vmax.xlane.f32.xlu0 %v352_v15  ;;  %450 = vmax.xlane.f32.xlu1 %v449_v16 }
 0x52f   :  { %v539_v17 = vpop.f32.mrf.mxu3 }
 0x530   :  { %v545_v18 = vmul.f32 0.35355338, %v539_v17 }
 0x532   :  { %v547_v21 = vadd.f32 %v545_v18, %v1983_v19 }
 0x534   :  { %v549_v22 = vsel %vm248_vm12, %v547_v21, -inf }
 0x535   :  { %550 = vmax.xlane.f32.xlu0 %v549_v22 }
 0x537   :  { %v542_v23 = vpop.f32.mrf.mxu3 }
 0x538   :  { %v546_v25 = vmul.f32 0.35355338, %v542_v23 }
 0x53a   :  { %v548_v27 = vadd.f32 %v546_v25, %v1990_v26 }
 0x53c   :  { %v552_v28 = vsel %vm248_vm12, %v548_v27, -inf }
 0x53d   :  { %553 = vmax.xlane.f32.xlu2 %v552_v28 }
 0x549   :  { %1666 = vrot.lane.b32.xlu0 %v1996_v30, %s1844_s21 }
 0x551   :  { %1676 = vrot.lane.b32.xlu0 %v1996_v30, %s1845_s22 }
 0x587   :  { %v454_v29 = vpop.xlane.xlu2 %453 }
 0x588   :  { %v456_v31 = vsub.f32 %v448_v3, %v454_v29 }
 0x58a   :  { %v459_v33 = vmul.f32 1.442695, %v456_v31 }
 0x58c   :  { %1733 = vpow2.f32 %v459_v33 }
 0x592   :  { %v2060_v34 = vpop.eup %1733 }
 0x593   :  { %v464_v35 = vsel %vm248_vm12, %v2060_v34, 0.0 }
 0x594   :  { %465 = vadd.xlane.f32.xlu1 %v464_v35 }
 0x598   :  { %v351_v36 = vpop.xlane.xlu1 %350 }
 0x599   :  { %v355_v37 = vsub.f32 %v347_v8, %v351_v36 }
 0x59b   :  { %v357_v38 = vmul.f32 1.442695, %v355_v37  ;;  %v101_v37 = vld [vmem:[%s2503_s1 + $0x68] sm:$0xff] }
 0x59c   :  { %656 = vmatpush.msra.mxu2 %v101_v37  ;;  %v1704_v37 = vld [vmem:[%s2507_s5 + $0x14] ss:$0 sm:$0xff] }
 0x59d   :  { %1735 = vpow2.f32 %v357_v38  ;;  %v100_v38 = vld [vmem:[%s2503_s1 + $0x60] sm:$0xff] }
 0x59e   :  { %657 = vmatpush.msra.mxu2 %v100_v38 }
 0x5a0   :  { %v354_v39 = vpop.xlane.xlu0 %353  ;;  %v451_v40 = vpop.xlane.xlu1 %450 }
 0x5a1   :  { %v356_v41 = vsub.f32 %v348_v14, %v354_v39  ;;  %v455_v44 = vsub.f32 %v447_v13, %v451_v40  ;;  %v99_v39 = vld [vmem:[%s2503_s1 + $0x58] sm:$0xff]  ;;  %v98_v40 = vld [vmem:[%s2503_s1 + $0x50] sm:$0xff] }
 0x5a2   :  { %658 = vmatpush.msra.mxu2 %v99_v39 }
 0x5a3   :  { %v1736_v42 = vpop.eup %1735  ;;  %v359_v43 = vmul.f32 1.442695, %v356_v41  ;;  %v457_v46 = vmul.f32 1.442695, %v455_v44 }
 0x5a4   :  { %v361_v45 = vsel %vm248_vm12, %v1736_v42, 0.0  ;;  %659 = vmatpush.msra.mxu2 %v98_v40  ;;  %v108_v40 = vld [vmem:[%s2503_s1 + $0xa0] sm:$0xff] }
 0x5a5   :  { %362 = vadd.xlane.f32.xlu1 %v361_v45  ;;  %1737 = vpow2.f32 %v359_v43 }
 0x5a6   :  { %1739 = vpow2.f32 %v457_v46 }
 0x5a8   :  { %v551_v47 = vpop.xlane.xlu0 %550 }
 0x5a9   :  { %v555_v49 = vsub.f32 %v547_v21, %v551_v47 }
 0x5ab   :  { %v1738_v48 = vpop.eup %1737  ;;  %v557_v51 = vmul.f32 1.442695, %v555_v49 }
 0x5ac   :  { %v364_v50 = vsel %vm248_vm12, %v1738_v48, 0.0  ;;  %v1740_v53 = vpop.eup %1739 }
 0x5ad   :  { %365 = vadd.xlane.f32.xlu2 %v364_v50  ;;  %1741 = vpow2.f32 %v557_v51  ;;  %v461_v55 = vsel %vm248_vm12, %v1740_v53, 0.0 }
 0x5b0   :  { %v554_v52 = vpop.xlane.xlu2 %553 }
 0x5b1   :  { %v556_v54 = vsub.f32 %v548_v27, %v554_v52 }
 0x5b3   :  { %v559_v56 = vmul.f32 1.442695, %v556_v54  ;;  %v1742_v57 = vpop.eup %1741 }
 0x5b4   :  { %v561_v60 = vsel %vm248_vm12, %v1742_v57, 0.0 }
 0x5b5   :  { %462 = vadd.xlane.f32.xlu2 %v461_v55  ;;  %1743 = vpow2.f32 %v559_v56 }
 0x5bb   :  { %v1667_v58 = vpop.permute.xlu0 %1666  ;;  %v1744_v62 = vpop.eup %1743 }
 0x5bc   :  { %v1668_v59 = vunpack.i.l.bf16 %v1667_v58  ;;  %v1669_v61 = vunpack.i.h.bf16 %v1667_v58  ;;  %v564_v63 = vsel %vm248_vm12, %v1744_v62, 0.0 }
 0x5bd   :  { %562 = vadd.xlane.f32.xlu2 %v561_v60 }
 0x5be   :  { %1671 = vrot.lane.b32.xlu1 %v1996_v30, %s1846_s23  ;;  %397 = vmatpush.msra.mxu1 %v1668_v59 }
 0x5c0   :  { %398 = vmatpush.msra.mxu1 %v1669_v61 }
 0x5c3   :  { %v1677_v14 = vpop.permute.xlu0 %1676 }
 0x5c4   :  { %v1678_v18 = vunpack.i.l.bf16 %v1677_v14  ;;  %v1679_v21 = vunpack.i.h.bf16 %v1677_v14  ;;  %v115_v14 = vld [vmem:[%s2503_s1 + $0xd8] sm:$0xff] }
 0x5c5   :  { %565 = vadd.xlane.f32.xlu2 %v564_v63 }
 0x607   :  { %v466_v0 = vpop.xlane.xlu1 %465 }
 0x618   :  { %v363_v1 = vpop.xlane.xlu1 %362 }
 0x619   :  { %1745 = vrcp.f32 %v363_v1 }
 0x61f   :  { %v1746_v3 = vpop.eup %1745 }
 0x620   :  { %v369_v4 = vmul.f32 %v1746_v3, %v1736_v42  ;;  %v366_v6 = vpop.xlane.xlu2 %365 }
 0x621   :  { %1747 = vrcp.f32 %v366_v6  ;;  %v97_v6 = vld [vmem:[%s2505_s3 + $0x18] sm:$0xff] }
 0x622   :  { %1588 = vmatmul.msk.f32.vlgmr.msra.gmra.mxu1 %vm248_vm12, %v369_v4  ;;  %1749 = vrcp.f32 %v466_v0 }
 0x627   :  { %v1748_v7 = vpop.eup %1747 }
 0x628   :  { %v463_v8 = vpop.xlane.xlu2 %462  ;;  %v370_v9 = vmul.f32 %v1748_v7, %v1738_v48  ;;  %v1750_v30 = vpop.eup %1749  ;;  %v96_v7 = vld [vmem:[%s2505_s3 + $0x10] sm:$0xff] }
 0x629   :  { %1751 = vrcp.f32 %v463_v8  ;;  %v470_v17 = vmul.f32 %v1750_v30, %v2060_v34  ;;  %v95_v8 = vld [vmem:[%s2505_s3 + $0x8] sm:$0xff] }
 0x62a   :  { %1589 = vmatmul.msk.f32.gmra.mxu1 %vm248_vm12, %v370_v9  ;;  %v94_v9 = vld [vmem:[%s2505_s3] sm:$0xff] }
 0x62f   :  { %v1752_v11 = vpop.eup %1751 }
 0x630   :  { %v1672_v10 = vpop.permute.xlu1 %1671  ;;  %v563_v13 = vpop.xlane.xlu2 %562  ;;  %v469_v16 = vmul.f32 %v1752_v11, %v1740_v53 }
 0x631   :  { %v1673_v12 = vunpack.i.l.bf16 %v1672_v10  ;;  %v1674_v15 = vunpack.i.h.bf16 %v1672_v10  ;;  %1753 = vrcp.f32 %v563_v13  ;;  %v116_v13 = vld [vmem:[%s2503_s1 + $0xe0] sm:$0xff] }
 0x633   :  { %497 = vmatpush.msra.mxu0 %v1673_v12  ;;  %1638 = vmatpush.msrb.mxu1 %v1673_v12  ;;  %v117_v12 = vld [vmem:[%s2503_s1 + $0xe8] sm:$0xff] }
 0x634   :  { %751 = vmatpush.msrb.mxu3 %v117_v12 }
 0x635   :  { %498 = vmatpush.msra.mxu0 %v1674_v15  ;;  %1639 = vmatpush.msrb.mxu1 %v1674_v15 }
 0x636   :  { %1594 = vmatmul.msk.f32.vlgmr.msra.gmra.mxu0 %vm248_vm12, %v469_v16  ;;  %1595 = vmatmul.msk.f32.vlgmr.msrb.gmra.mxu1 %vm248_vm12, %v470_v17  ;;  %v114_v17 = vld [vmem:[%s2503_s1 + $0xd0] sm:$0xff] }
 0x637   :  { %597 = vmatpush.msra.mxu1 %v1678_v18  ;;  %v1754_v22 = vpop.eup %1753  ;;  %738 = vmatpush.msrb.mxu0 %v97_v6 }
 0x638   :  { %v566_v23 = vpop.xlane.xlu2 %565  ;;  %v569_v25 = vmul.f32 %v1754_v22, %v1742_v57  ;;  %752 = vmatpush.msrb.mxu3 %v116_v13 }
 0x639   :  { %598 = vmatpush.msra.mxu1 %v1679_v21  ;;  %1755 = vrcp.f32 %v566_v23  ;;  %739 = vmatpush.msrb.mxu0 %v96_v7  ;;  %v113_v23 = vld [vmem:[%s2503_s1 + $0xc8] sm:$0xff] }
 0x63a   :  { %753 = vmatpush.msrb.mxu3 %v115_v14 }
 0x63b   :  { %740 = vmatpush.msrb.mxu0 %v95_v8 }
 0x63c   :  { %754 = vmatpush.msrb.mxu3 %v114_v17 }
 0x63d   :  { %741 = vmatpush.msrb.mxu0 %v94_v9 }
 0x63e   :  { %1600 = vmatmul.msk.f32.vlgmr.msra.gmra.mxu1 %vm248_vm12, %v569_v25  ;;  %755 = vmatpush.msrb.mxu3 %v113_v23  ;;  %v787_v23 = vld [vmem:[%s2504_s2 + $0x20] sm:$0xff] }
 0x63f   :  { %v1756_v27 = vpop.eup %1755 }
 0x640   :  { %v570_v28 = vmul.f32 %v1756_v27, %v1744_v62  ;;  %v112_v27 = vld [vmem:[%s2503_s1 + $0xc0] sm:$0xff] }
 0x641   :  { %756 = vmatpush.msrb.mxu3 %v112_v27 }
 0x646   :  { %1601 = vmatmul.msk.f32.gmra.mxu1 %vm248_vm12, %v570_v28 }
 0x69f   :  { %v400_v29 = vpop.f32.mrf.mxu1 }
 0x6a0   :  { %608 = vrot.lane.b32.xlu0 %v400_v29, %s1847_s24  ;;  %v111_v29 = vld [vmem:[%s2503_s1 + $0xb8] sm:$0xff] }
 0x6a1   :  { %757 = vmatpush.msrb.mxu3 %v111_v29 }
 0x6a7   :  { %v403_v31 = vpop.f32.mrf.mxu1 }
 0x6a8   :  { %610 = vrot.lane.b32.xlu1 %v403_v31, %s1847_s24 }
 0x6b3   :  { %v500_v33 = vpop.f32.mrf.mxu0  ;;  %v503_v34 = vpop.f32.mrf.mxu1 }
 0x6b4   :  { %616 = vrot.lane.b32.xlu2 %v500_v33, %s1848_s25  ;;  %v110_v33 = vld [vmem:[%s2503_s1 + $0xb0] sm:$0xff] }
 0x6b5   :  { %758 = vmatpush.msrb.mxu3 %v110_v33 }
 0x6bb   :  { %v600_v35 = vpop.f32.mrf.mxu1 }
 0x6bc   :  { %624 = vrot.lane.b32.xlu0 %v600_v35, %s1849_s26 }
 0x6c3   :  { %v603_v36 = vpop.f32.mrf.mxu1 }
 0x6c4   :  { %618 = vrot.lane.b32.xlu0 %v503_v34, %s1848_s25  ;;  %626 = vrot.lane.b32.xlu1 %v603_v36, %s1849_s26  ;;  %v109_v36 = vld [vmem:[%s2503_s1 + $0xa8] sm:$0xff] }
 0x6c5   :  { %759 = vmatpush.msrb.mxu3 %v109_v36 }
 0x6c7   :  { %760 = vmatpush.msrb.mxu3 %v108_v40 }
 0x70e   :  { %v617_v43 = vpop.permute.xlu2 %616 }
 0x712   :  { %v609_v41 = vpop.permute.xlu0 %608 }
 0x713   :  { %v630_v42 = vsel %vm212_vm11, %v2040_v2, %v609_v41  ;;  %v1703_v2 = vld [vmem:[%s2507_s5 + $0x13] ss:$0 sm:$0xff] }
 0x714   :  { %v632_v45 = vsel %vm248_vm12, %v630_v42, %v617_v43  ;;  %v1705_v43 = vld [vmem:[%s2507_s5 + $0x15] ss:$0 sm:$0xff] }
 0x71a   :  { %v611_v44 = vpop.permute.xlu1 %610 }
 0x71b   :  { %v631_v48 = vsel %vm212_vm11, %v2044_v5, %v611_v44  ;;  %v107_v44 = vld [vmem:[%s2503_s1 + $0x98] sm:$0xff] }
 0x71c   :  { %761 = vmatpush.msrb.mxu3 %v107_v44 }
 0x72e   :  { %v625_v46 = vpop.permute.xlu0 %624 }
 0x72f   :  { %v635_v47 = vsel %vm634_vm13, %v632_v45, %v625_v46 }
 0x730   :  { %1602 = vmatmul.msk.f32.vlgmr.msra.gmra.mxu2 %vm118_vm3, %v635_v47  ;;  %v106_v47 = vld [vmem:[%s2503_s1 + $0x90] sm:$0xff] }
 0x731   :  { %762 = vmatpush.msrb.mxu3 %v106_v47 }
 0x736   :  { %v619_v49 = vpop.permute.xlu0 %618  ;;  %v627_v50 = vpop.permute.xlu1 %626 }
 0x737   :  { %v633_v51 = vsel %vm248_vm12, %v631_v48, %v619_v49 }
 0x738   :  { %v636_v52 = vsel %vm634_vm13, %v633_v51, %v627_v50  ;;  %v105_v50 = vld [vmem:[%s2503_s1 + $0x88] sm:$0xff] }
 0x739   :  { %1603 = vmatmul.msk.f32.gmra.mxu2 %vm118_vm3, %v636_v52  ;;  %763 = vmatpush.msrb.mxu3 %v105_v50 }
 0x7b3   :  { %v661_v53 = vpop.f32.mrf.mxu2 }
 0x7b4   :  { %v662_v54 = vadd.f32 %v1703_v2, %v661_v53 }
 0x7b6   :  { %v2110_v55 = vadd.f32 %v662_v54, %v1922_v20 }
 0x7b8   :  { %v669_v5 = vsel %vm118_vm3, %v2110_v55, 0.0 }
 0x7b9   :  { %670 = vadd.xlane.f32.xlu0 %v669_v5  ;;  %v104_v5 = vld [vmem:[%s2503_s1 + $0x80] sm:$0xff] }
 0x7ba   :  { %764 = vmatpush.msrb.mxu3 %v104_v5  ;;  %v1710_v5 = vld [vmem:[%s2507_s5 + $0x1a] ss:$0 sm:$0xff] }
 0x7bc   :  { %v664_v56 = vpop.f32.mrf.mxu2 }
 0x7bd   :  { %v665_v57 = vadd.f32 %v1703_v2, %v664_v56  ;;  %v103_v56 = vld [vmem:[%s2503_s1 + $0x78] sm:$0xff] }
 0x7be   :  { %765 = vmatpush.msrb.mxu3 %v103_v56 }
 0x7bf   :  { %v2115_v58 = vadd.f32 %v665_v57, %v1929_v24  ;;  %v102_v57 = vld [vmem:[%s2503_s1 + $0x70] sm:$0xff] }
 0x7c0   :  { %766 = vmatpush.msrb.mxu3 %v102_v57 }
 0x7c1   :  { %v672_v59 = vsel %vm118_vm3, %v2115_v58, 0.0 }
 0x7c2   :  { %673 = vadd.xlane.f32.xlu1 %v672_v59  ;;  %v1706_v59 = vld [vmem:[%s2507_s5 + $0x16] ss:$0 sm:$0xff] }
 0x82c   :  { %v671_v60 = vpop.xlane.xlu0 %670 }
 0x82d   :  { %v675_v61 = vmul.f32 %v671_v60, %v1933_v32 }
 0x82f   :  { %v677_v62 = vsub.f32 %v2110_v55, %v675_v61 }
 0x831   :  { %v679_v20 = vmul.f32 %v677_v62, %v677_v62 }
 0x833   :  { %v681_v63 = vsel %vm118_vm3, %v679_v20, 0.0 }
 0x834   :  { %682 = vadd.xlane.f32.xlu2 %v681_v63 }
 0x835   :  { %v674_v0 = vpop.xlane.xlu1 %673 }
 0x836   :  { %v676_v1 = vmul.f32 %v674_v0, %v1933_v32 }
 0x838   :  { %v2124_v3 = vsub.f32 %v2115_v58, %v676_v1  ;;  %v1707_v1 = vld [vmem:[%s2507_s5 + $0x17] ss:$0 sm:$0xff] }
 0x83a   :  { %v680_v24 = vmul.f32 %v2124_v3, %v2124_v3 }
 0x83c   :  { %v684_v4 = vsel %vm118_vm3, %v680_v24, 0.0 }
 0x83d   :  { %685 = vadd.xlane.f32.xlu0 %v684_v4 }
 0x8a7   :  { %v683_v30 = vpop.xlane.xlu2 %682 }
 0x8a8   :  { %v687_v10 = vmul.f32 %v683_v30, %v1933_v32 }
 0x8aa   :  { %v689_v11 = vadd.f32 1e-05, %v687_v10 }
 0x8ac   :  { %1757 = vrsqrt.f32 %v689_v11  ;;  %vm697_vm15 = vweird.f32 %v689_v11 }
 0x8b0   :  { %v686_v15 = vpop.xlane.xlu0 %685 }
 0x8b1   :  { %v688_v16 = vmul.f32 %v686_v15, %v1933_v32 }
 0x8b2   :  { %v1758_v18 = vpop.eup %1757 }
 0x8b3   :  { %v692_v21 = vmul.f32 %v1758_v18, %v689_v11  ;;  %v690_v22 = vadd.f32 1e-05, %v688_v16  ;;  %vm698_vm14 = vweird.f32 %v1758_v18 }
 0x8b4   :  { %vm699_vm1 = vmor %vm697_vm15, %vm698_vm14 }
 0x8b5   :  { %v693_v25 = vmul.f32 %v1758_v18, %v692_v21  ;;  %1759 = vrsqrt.f32 %v690_v22  ;;  %vm707_vm4 = vweird.f32 %v690_v22  ;;  %v789_v21 = vld [vmem:[%s2504_s2 + $0x30] sm:$0xff] }
 0x8b7   :  { %v694_v28 = vmul.f32 0.5, %v693_v25 }
 0x8b9   :  { %v695_v31 = vsub.f32 1.5, %v694_v28 }
 0x8bb   :  { %v1760_v34 = vpop.eup %1759  ;;  %v696_v35 = vmul.f32 %v1758_v18, %v695_v31 }
 0x8bc   :  { %v702_v38 = vmul.f32 %v1760_v34, %v690_v22  ;;  %vm708_vm2 = vweird.f32 %v1760_v34  ;;  %v788_v22 = vld [vmem:[%s2504_s2 + $0x28] sm:$0xff] }
 0x8bd   :  { %v700_v39 = vsel %vm699_vm1, %v1758_v18, %v696_v35  ;;  %vm709_vm5 = vmor %vm707_vm4, %vm708_vm2  ;;  %v790_v18 = vld [vmem:[%s2504_s2 + $0x38] sm:$0xff] }
 0x8be   :  { %v711_v41 = vmul.f32 %v700_v39, %v677_v62  ;;  %v703_v42 = vmul.f32 %v1760_v34, %v702_v38  ;;  %884 = vmatpush.msrb.mxu1 %v790_v18 }
 0x8c0   :  { %v714_v45 = vmul.f32 %v1704_v37, %v711_v41  ;;  %v704_v46 = vmul.f32 0.5, %v703_v42  ;;  %885 = vmatpush.msrb.mxu1 %v789_v21  ;;  %v1708_v41 = vld [vmem:[%s2507_s5 + $0x18] ss:$0 sm:$0xff] }
 0x8c2   :  { %v705_v48 = vsub.f32 1.5, %v704_v46  ;;  %v717_v49 = vadd.f32 %v1705_v43, %v714_v45  ;;  %886 = vmatpush.msrb.mxu1 %v788_v22  ;;  %v1709_v46 = vld [vmem:[%s2507_s5 + $0x19] ss:$0 sm:$0xff] }
 0x8c4   :  { %v706_v51 = vmul.f32 %v1760_v34, %v705_v48  ;;  %1604 = vmatmul.msk.f32.vlgmr.msrb.gmra.mxu0 %vm118_vm3, %v717_v49  ;;  %887 = vmatpush.msrb.mxu1 %v787_v23 }
 0x8c6   :  { %v710_v52 = vsel %vm709_vm5, %v1760_v34, %v706_v51 }
 0x8c7   :  { %v712_v2 = vmul.f32 %v710_v52, %v2124_v3 }
 0x8c9   :  { %v715_v53 = vmul.f32 %v1704_v37, %v712_v2 }
 0x8cb   :  { %v718_v54 = vadd.f32 %v1705_v43, %v715_v53 }
 0x8cd   :  { %1605 = vmatmul.msk.f32.gmra.mxu0 %vm118_vm3, %v718_v54 }
 0x941   :  { %v743_v60 = vpop.f32.mrf.mxu0 }
 0x942   :  { %v744_v61 = vadd.f32 %v1706_v59, %v743_v60 }
 0x944   :  { %v749_v62 = vmax.f32 %v744_v61, 0.0 }
 0x946   :  { %767 = vmatmul.f32.vlgmr.msrb.gmra.mxu3 %v749_v62 }
 0x94a   :  { %v746_v20 = vpop.f32.mrf.mxu0 }
 0x94b   :  { %v747_v63 = vadd.f32 %v1706_v59, %v746_v20 }
 0x94d   :  { %v750_v0 = vmax.f32 %v747_v63, 0.0 }
 0x94f   :  { %770 = vmatmul.f32.gmra.mxu3 %v750_v0 }
 0x9c9   :  { %v768_v3 = vpop.f32.mrf.mxu3 }
 0x9ca   :  { %v774_v24 = vadd.f32 %v768_v3, %v2110_v55 }
 0x9cc   :  { %v2207_v4 = vadd.f32 %v1707_v1, %v774_v24 }
 0x9ce   :  { %v815_v6 = vsel %vm118_vm3, %v2207_v4, 0.0 }
 0x9cf   :  { %816 = vadd.xlane.f32.xlu1 %v815_v6 }
 0x9d2   :  { %v771_v7 = vpop.f32.mrf.mxu3 }
 0x9d3   :  { %v775_v8 = vadd.f32 %v771_v7, %v2115_v58 }
 0x9d5   :  { %v2212_v9 = vadd.f32 %v1707_v1, %v775_v8 }
 0x9d7   :  { %v818_v30 = vsel %vm118_vm3, %v2212_v9, 0.0 }
 0x9d8   :  { %819 = vadd.xlane.f32.xlu2 %v818_v30 }
 0xa42   :  { %v817_v10 = vpop.xlane.xlu1 %816 }
 0xa43   :  { %v821_v11 = vmul.f32 %v817_v10, %v1933_v32 }
 0xa45   :  { %v823_v55 = vsub.f32 %v2207_v4, %v821_v11 }
 0xa47   :  { %v825_v12 = vmul.f32 %v823_v55, %v823_v55 }
 0xa49   :  { %v827_v13 = vsel %vm118_vm3, %v825_v12, 0.0 }
 0xa4a   :  { %828 = vadd.xlane.f32.xlu0 %v827_v13 }
 0xa4b   :  { %v820_v14 = vpop.xlane.xlu2 %819 }
 0xa4c   :  { %v822_v15 = vmul.f32 %v820_v14, %v1933_v32 }
 0xa4e   :  { %v824_v58 = vsub.f32 %v2212_v9, %v822_v15 }
 0xa50   :  { %v826_v16 = vmul.f32 %v824_v58, %v824_v58 }
 0xa52   :  { %v830_v17 = vsel %vm118_vm3, %v826_v16, 0.0 }
 0xa53   :  { %831 = vadd.xlane.f32.xlu1 %v830_v17 }
 0xabd   :  { %v829_v25 = vpop.xlane.xlu0 %828 }
 0xabe   :  { %v833_v27 = vmul.f32 %v829_v25, %v1933_v32 }
 0xac0   :  { %v835_v28 = vadd.f32 1e-05, %v833_v27 }
 0xac2   :  { %1761 = vrsqrt.f32 %v835_v28  ;;  %vm843_vm7 = vweird.f32 %v835_v28 }
 0xac6   :  { %v832_v29 = vpop.xlane.xlu1 %831 }
 0xac7   :  { %v834_v31 = vmul.f32 %v832_v29, %v1933_v32 }
 0xac8   :  { %v1762_v33 = vpop.eup %1761 }
 0xac9   :  { %v838_v34 = vmul.f32 %v1762_v33, %v835_v28  ;;  %v836_v35 = vadd.f32 1e-05, %v834_v31  ;;  %vm844_vm6 = vweird.f32 %v1762_v33 }
 0xaca   :  { %vm845_vm8 = vmor %vm843_vm7, %vm844_vm6 }
 0xacb   :  { %v839_v36 = vmul.f32 %v1762_v33, %v838_v34  ;;  %1763 = vrsqrt.f32 %v836_v35  ;;  %vm853_vm10 = vweird.f32 %v836_v35 }
 0xacd   :  { %v840_v37 = vmul.f32 0.5, %v839_v36 }
 0xacf   :  { %v841_v38 = vsub.f32 1.5, %v840_v37 }
 0xad1   :  { %v1764_v39 = vpop.eup %1763  ;;  %v842_v40 = vmul.f32 %v1762_v33, %v841_v38 }
 0xad2   :  { %v848_v42 = vmul.f32 %v1764_v39, %v836_v35  ;;  %vm854_vm9 = vweird.f32 %v1764_v39 }
 0xad3   :  { %v846_v43 = vsel %vm845_vm8, %v1762_v33, %v842_v40  ;;  %vm855_vm14 = vmor %vm853_vm10, %vm854_vm9 }
 0xad4   :  { %v857_v44 = vmul.f32 %v846_v43, %v823_v55  ;;  %v849_v45 = vmul.f32 %v1764_v39, %v848_v42 }
 0xad6   :  { %v860_v47 = vmul.f32 %v1708_v41, %v857_v44  ;;  %v850_v48 = vmul.f32 0.5, %v849_v45 }
 0xad8   :  { %v851_v49 = vsub.f32 1.5, %v850_v48  ;;  %v863_v50 = vadd.f32 %v1709_v46, %v860_v47  ;;  %v1805_v48 = vld [vmem:[%s2507_s5 + $0x8] sm:$0xff] }
 0xada   :  { %v852_v51 = vmul.f32 %v1764_v39, %v851_v49  ;;  %1606 = vmatmul.msk.f32.vlgmr.msrb.gmra.mxu1 %vm118_vm3, %v863_v50 }
 0xadc   :  { %v856_v52 = vsel %vm855_vm14, %v1764_v39, %v852_v51 }
 0xadd   :  { %v858_v2 = vmul.f32 %v856_v52, %v824_v58 }
 0xadf   :  { %v861_v53 = vmul.f32 %v1708_v41, %v858_v2  ;;  %v1806_v2 = vld [vmem:[%s2507_s5] sm:$0xff] }
 0xae1   :  { %v864_v54 = vadd.f32 %v1709_v46, %v861_v53 }
 0xae3   :  { %1607 = vmatmul.msk.f32.gmra.mxu1 %vm118_vm3, %v864_v54 }
 0xb57   :  { %v889_v56 = vpop.f32.mrf.mxu1 }
 0xb58   :  { %v890_v57 = vadd.f32 %v1710_v5, %v889_v56 }
 0xb5a   :  { %897 = vrot.lane.b32.xlu0 %v890_v57, %s1836_s10 }
 0xb60   :  { %v892_v59 = vpop.f32.mrf.mxu1 }
 0xb61   :  { %v2248_v60 = vadd.f32 %v1710_v5, %v892_v59 }
 0xb62   :  { %997 = vrot.lane.b32.xlu0 %v890_v57, %s1839_s0 }
 0xb63   :  { %899 = vrot.lane.b32.xlu2 %v2248_v60, %s1836_s10  ;;  %v2257_v61 = vpack.i.bf16 %v890_v57, %v2248_v60 }
 0xb6a   :  { %999 = vrot.lane.b32.xlu0 %v2248_v60, %s1839_s0 }
 0xb6b   :  { %993 = vrot.lane.b32.xlu2 %v890_v57, %s1838_s16 }
 0xb72   :  { %1099 = vrot.lane.b32.xlu0 %v2248_v60, %s1842_s19 }
 0xb73   :  { %1681 = vrot.lane.b32.xlu2 %v2257_v61, %s1837_s15  ;;  %s1560_s15 = sshll.u32 %s2508_s6, 4  ;;  %s1561_s15 = int_to_ptr.hbm [resolvable:$true] %s1560_s15 }
 0xb7a   :  { %1097 = vrot.lane.b32.xlu0 %v890_v57, %s1842_s19 }
 0xb7b   :  { %1199 = vrot.lane.b32.xlu2 %v2248_v60, %s1841_s18 }
 0xb82   :  { %1093 = vrot.lane.b32.xlu0 %v890_v57, %s1840_s17 }
 0xb83   :  { %1197 = vrot.lane.b32.xlu2 %v890_v57, %s1841_s18 }
 0xb8a   :  { %1095 = vrot.lane.b32.xlu0 %v2248_v60, %s1840_s17 }
 0xb8b   :  { %1193 = vrot.lane.b32.xlu2 %v890_v57, %s1843_s20 }
 0xbbd   :  { %v900_v62 = vpop.permute.xlu2 %899 }
 0xbbe   :  { %1608 = vmatpush.xpose.msk.msrb.mxu2 %vm212_vm11, %v900_v62 }
 0xbc5   :  { %v994_v20 = vpop.permute.xlu2 %993 }
 0xbcc   :  { %v898_v63 = vpop.permute.xlu0 %897 }
 0xbcd   :  { %1609 = vmatpush.xpose.msk.msrb.mxu2 %vm212_vm11, %v898_v63  ;;  %v1682_v0 = vpop.permute.xlu2 %1681 }
 0xbce   :  { %v1683_v1 = vunpack.i.l.bf16 %v1682_v0  ;;  %v1684_v3 = vunpack.i.h.bf16 %v1682_v0 }
 0xbd0   :  { %1610 = vmatmul.msk.f32.vlgmr.msrb.gmra.mxu2 %vm212_vm11, %v890_v57  ;;  %984 = vmatpush.msra.mxu0 %v1683_v1 }
 0xbd2   :  { %985 = vmatpush.msra.mxu0 %v1684_v3 }
 0xbd4   :  { %v998_v24 = vpop.permute.xlu0 %997 }
 0xbd5   :  { %v1200_v6 = vpop.permute.xlu2 %1199 }
 0xbd8   :  { %1611 = vmatmul.msk.f32.gmra.mxu2 %vm212_vm11, %v2248_v60 }
 0xbdc   :  { %v1000_v7 = vpop.permute.xlu0 %999 }
 0xbdd   :  { %1614 = vmatpush.xpose.msk.msra.mxu1 %vm212_vm11, %v1000_v7  ;;  %v1198_v30 = vpop.permute.xlu2 %1197 }
 0xbe1   :  { %1615 = vmatpush.xpose.msk.msra.mxu1 %vm212_vm11, %v998_v24 }
 0xbe4   :  { %v1100_v8 = vpop.permute.xlu0 %1099  ;;  %1616 = vmatmul.msk.f32.vlgmr.msra.gmra.mxu1 %vm212_vm11, %v994_v20 }
 0xbe5   :  { %1626 = vmatpush.xpose.msk.msrb.mxu1 %vm212_vm11, %v1200_v6  ;;  %1620 = vmatpush.xpose.msk.msrb.mxu0 %vm212_vm11, %v1100_v8  ;;  %v1194_v36 = vpop.permute.xlu2 %1193 }
 0xbe9   :  { %1627 = vmatpush.xpose.msk.msrb.mxu1 %vm212_vm11, %v1198_v30 }
 0xbec   :  { %v1098_v10 = vpop.permute.xlu0 %1097 }
 0xbed   :  { %1621 = vmatpush.xpose.msk.msrb.mxu0 %vm212_vm11, %v1098_v10 }
 0xbf4   :  { %v1094_v43 = vpop.permute.xlu0 %1093 }
 0xbfc   :  { %v1096_v47 = vpop.permute.xlu0 %1095 }
 0xc53   :  { %v926_v11 = vpop.f32.mrf.mxu2 }
 0xc54   :  { %v932_v55 = vmul.f32 0.35355338, %v926_v11 }
 0xc56   :  { %v934_v12 = vadd.f32 %v932_v55, %v1983_v19 }
 0xc58   :  { %v936_v13 = vsel %vm248_vm12, %v934_v12, -inf }
 0xc59   :  { %937 = vmax.xlane.f32.xlu1 %v936_v13 }
 0xc5b   :  { %v929_v14 = vpop.f32.mrf.mxu2 }
 0xc5c   :  { %v933_v15 = vmul.f32 0.35355338, %v929_v14 }
 0xc5e   :  { %v935_v58 = vadd.f32 %v933_v15, %v1990_v26 }
 0xc60   :  { %v939_v16 = vsel %vm248_vm12, %v935_v58, -inf }
 0xc61   :  { %940 = vmax.xlane.f32.xlu1 %v939_v16  ;;  %v1026_v17 = vpop.f32.mrf.mxu1 }
 0xc62   :  { %v1032_v18 = vmul.f32 0.35355338, %v1026_v17 }
 0xc64   :  { %v1034_v21 = vadd.f32 %v1032_v18, %v1983_v19 }
 0xc66   :  { %v1036_v22 = vsel %vm248_vm12, %v1034_v21, -inf }
 0xc67   :  { %1037 = vmax.xlane.f32.xlu2 %v1036_v22 }
 0xc7a   :  { %995 = vrot.lane.b32.xlu1 %v2248_v60, %s1838_s16  ;;  %s1851_s16 = smov 128  }
 0xccc   :  { %v938_v23 = vpop.xlane.xlu1 %937 }
 0xccd   :  { %v942_v25 = vsub.f32 %v934_v12, %v938_v23 }
 0xccf   :  { %v944_v27 = vmul.f32 1.442695, %v942_v25 }
 0xcd1   :  { %1765 = vpow2.f32 %v944_v27 }
 0xcd4   :  { %v941_v28 = vpop.xlane.xlu1 %940 }
 0xcd5   :  { %v943_v29 = vsub.f32 %v935_v58, %v941_v28 }
 0xcd7   :  { %v1766_v26 = vpop.eup %1765  ;;  %v946_v31 = vmul.f32 1.442695, %v943_v29 }
 0xcd8   :  { %v948_v33 = vsel %vm248_vm12, %v1766_v26, 0.0 }
 0xcd9   :  { %1767 = vpow2.f32 %v946_v31  ;;  %949 = vadd.xlane.f32.xlu1 %v948_v33 }
 0xcda   :  { %v1038_v57 = vpop.xlane.xlu2 %1037 }
 0xcdb   :  { %v1042_v59 = vsub.f32 %v1034_v21, %v1038_v57 }
 0xcdf   :  { %v1768_v34 = vpop.eup %1767 }
 0xce0   :  { %v951_v19 = vsel %vm248_vm12, %v1768_v34, 0.0 }
 0xce1   :  { %952 = vadd.xlane.f32.xlu1 %v951_v19 }
 0xcec   :  { %v996_v35 = vpop.permute.xlu1 %995 }
 0xced   :  { %1617 = vmatmul.msk.f32.gmra.mxu1 %vm212_vm11, %v996_v35 }
 0xcf5   :  { %1628 = vmatmul.msk.f32.vlgmr.msrb.gmra.mxu1 %vm212_vm11, %v1194_v36 }
 0xcfa   :  { %1195 = vrot.lane.b32.xlu1 %v2248_v60, %s1843_s20  ;;  %v1044_v60 = vmul.f32 1.442695, %v1042_v59 }
 0xd4c   :  { %v950_v37 = vpop.xlane.xlu1 %949 }
 0xd4d   :  { %1769 = vrcp.f32 %v950_v37 }
 0xd53   :  { %v1770_v38 = vpop.eup %1769 }
 0xd54   :  { %v956_v39 = vmul.f32 %v1770_v38, %v1766_v26  ;;  %v953_v40 = vpop.xlane.xlu1 %952 }
 0xd55   :  { %1771 = vrcp.f32 %v953_v40 }
 0xd56   :  { %1612 = vmatmul.msk.f32.vlgmr.msra.gmra.mxu0 %vm248_vm12, %v956_v39  ;;  %1773 = vpow2.f32 %v1044_v60 }
 0xd5b   :  { %v1772_v41 = vpop.eup %1771 }
 0xd5c   :  { %v957_v42 = vmul.f32 %v1772_v41, %v1768_v34  ;;  %v1774_v11 = vpop.eup %1773 }
 0xd5d   :  { %v1048_v15 = vsel %vm248_vm12, %v1774_v11, 0.0 }
 0xd5e   :  { %1613 = vmatmul.msk.f32.gmra.mxu0 %vm248_vm12, %v957_v42 }
 0xd66   :  { %1622 = vmatmul.msk.f32.vlgmr.msrb.gmra.mxu0 %vm212_vm11, %v1094_v43 }
 0xd6a   :  { %v1029_v44 = vpop.f32.mrf.mxu1 }
 0xd6b   :  { %v1033_v45 = vmul.f32 0.35355338, %v1029_v44 }
 0xd6c   :  { %v1196_v46 = vpop.permute.xlu1 %1195 }
 0xd6d   :  { %1629 = vmatmul.msk.f32.gmra.mxu1 %vm212_vm11, %v1196_v46  ;;  %v1035_v49 = vadd.f32 %v1805_v48, %v1033_v45 }
 0xd6e   :  { %1623 = vmatmul.msk.f32.gmra.mxu0 %vm212_vm11, %v1096_v47 }
 0xd6f   :  { %v1039_v50 = vsel %vm248_vm12, %v1035_v49, -inf }
 0xd70   :  { %1040 = vmax.xlane.f32.xlu0 %v1039_v50 }
 0xd72   :  { %v1226_v51 = vpop.f32.mrf.mxu1 }
 0xd73   :  { %v1232_v52 = vmul.f32 0.35355338, %v1226_v51 }
 0xd75   :  { %v1234_v53 = vadd.f32 %v1806_v2, %v1232_v52 }
 0xd77   :  { %v1236_v54 = vsel %vm248_vm12, %v1234_v53, -inf }
 0xd78   :  { %1237 = vmax.xlane.f32.xlu2 %v1236_v54 }
 0xdd3   :  { %v2310_v5 = vpop.f32.mrf.mxu0 }
 0xddb   :  { %v2312_v56 = vpop.f32.mrf.mxu0 }
 0xde3   :  { %v1041_v62 = vpop.xlane.xlu0 %1040  ;;  %v1126_v20 = vpop.f32.mrf.mxu0 }
 0xde4   :  { %v1132_v63 = vmul.f32 0.35355338, %v1126_v20  ;;  %v1043_v0 = vsub.f32 %v1035_v49, %v1041_v62 }
 0xde6   :  { %v1134_v1 = vadd.f32 %v1806_v2, %v1132_v63  ;;  %v1046_v24 = vmul.f32 1.442695, %v1043_v0 }
 0xde8   :  { %v1136_v3 = vsel %vm248_vm12, %v1134_v1, -inf  ;;  %1775 = vpow2.f32 %v1046_v24 }
 0xde9   :  { %1137 = vmax.xlane.f32.xlu1 %v1136_v3 }
 0xdea   :  { %v1229_v6 = vpop.f32.mrf.mxu1 }
 0xdeb   :  { %v1233_v7 = vmul.f32 0.35355338, %v1229_v6  ;;  %v1238_v8 = vpop.xlane.xlu2 %1237  ;;  %v1129_v30 = vpop.f32.mrf.mxu0 }
 0xdec   :  { %v1133_v10 = vmul.f32 0.35355338, %v1129_v30  ;;  %v1242_v12 = vsub.f32 %v1234_v53, %v1238_v8 }
 0xded   :  { %v1235_v55 = vadd.f32 %v1805_v48, %v1233_v7 }
 0xdee   :  { %v1135_v13 = vadd.f32 %v1805_v48, %v1133_v10  ;;  %v1244_v16 = vmul.f32 1.442695, %v1242_v12  ;;  %v1776_v17 = vpop.eup %1775  ;;  %v797_v12 = vld [vmem:[%s2503_s1 + $0x100] sm:$0xff] }
 0xdef   :  { %v1239_v14 = vsel %vm248_vm12, %v1235_v55, -inf  ;;  %v1051_v18 = vsel %vm248_vm12, %v1776_v17, 0.0 }
 0xdf0   :  { %1240 = vmax.xlane.f32.xlu0 %v1239_v14  ;;  %v1139_v58 = vsel %vm248_vm12, %v1135_v13, -inf  ;;  %1777 = vpow2.f32 %v1244_v16  ;;  %v795_v14 = vld [vmem:[%s2503_s1 + $0xf0] sm:$0xff] }
 0xdf1   :  { %1049 = vadd.xlane.f32.xlu1 %v1048_v15  ;;  %1140 = vmax.xlane.f32.xlu2 %v1139_v58 }
 0xdf6   :  { %v1778_v21 = vpop.eup %1777 }
 0xdf7   :  { %v1248_v22 = vsel %vm248_vm12, %v1778_v21, 0.0 }
 0xdf8   :  { %1052 = vadd.xlane.f32.xlu0 %v1051_v18 }
 0xe00   :  { %1249 = vadd.xlane.f32.xlu0 %v1248_v22 }
 0xe09   :  { %1686 = vrot.lane.b32.xlu2 %v2257_v61, %s1844_s21 }
 0xe11   :  { %1696 = vrot.lane.b32.xlu2 %v2257_v61, %s1845_s22 }
 0xe5c   :  { %v1138_v23 = vpop.xlane.xlu1 %1137 }
 0xe5d   :  { %v1142_v25 = vsub.f32 %v1134_v1, %v1138_v23 }
 0xe5f   :  { %v1144_v27 = vmul.f32 1.442695, %v1142_v25 }
 0xe61   :  { %1779 = vpow2.f32 %v1144_v27 }
 0xe63   :  { %v1241_v28 = vpop.xlane.xlu0 %1240 }
 0xe64   :  { %v1050_v29 = vpop.xlane.xlu1 %1049  ;;  %v1141_v26 = vpop.xlane.xlu2 %1140  ;;  %v1243_v33 = vsub.f32 %v1235_v55, %v1241_v28  ;;  %v798_v55 = vld [vmem:[%s2503_s1 + $0x108] sm:$0xff] }
 0xe65   :  { %v1143_v31 = vsub.f32 %v1135_v13, %v1141_v26  ;;  %1781 = vrcp.f32 %v1050_v29  ;;  %1342 = vmatpush.msra.mxu0 %v798_v55  ;;  %v796_v13 = vld [vmem:[%s2503_s1 + $0xf8] sm:$0xff]  ;;  %v805_v55 = vld [vmem:[%s2503_s1 + $0x140] sm:$0xff] }
 0xe66   :  { %v1246_v36 = vmul.f32 1.442695, %v1243_v33 }
 0xe67   :  { %v1780_v34 = vpop.eup %1779  ;;  %v1146_v19 = vmul.f32 1.442695, %v1143_v31  ;;  %1343 = vmatpush.msra.mxu0 %v797_v12 }
 0xe68   :  { %v1148_v35 = vsel %vm248_vm12, %v1780_v34, 0.0 }
 0xe69   :  { %1783 = vpow2.f32 %v1146_v19  ;;  %1149 = vadd.xlane.f32.xlu1 %v1148_v35  ;;  %1344 = vmatpush.msra.mxu0 %v796_v13 }
 0xe6a   :  { %1785 = vpow2.f32 %v1246_v36 }
 0xe6b   :  { %v1053_v37 = vpop.xlane.xlu0 %1052  ;;  %v1782_v39 = vpop.eup %1781  ;;  %1345 = vmatpush.msra.mxu0 %v795_v14 }
 0xe6c   :  { %v1687_v38 = vpop.permute.xlu2 %1686  ;;  %1787 = vrcp.f32 %v1053_v37  ;;  %v1056_v43 = vmul.f32 %v1782_v39, %v1774_v11 }
 0xe6d   :  { %v1688_v40 = vunpack.i.l.bf16 %v1687_v38  ;;  %v1689_v42 = vunpack.i.h.bf16 %v1687_v38 }
 0xe6f   :  { %v1784_v41 = vpop.eup %1783  ;;  %1084 = vmatpush.msra.mxu2 %v1688_v40 }
 0xe70   :  { %v1151_v44 = vsel %vm248_vm12, %v1784_v41, 0.0  ;;  %v1786_v45 = vpop.eup %1785 }
 0xe71   :  { %1152 = vadd.xlane.f32.xlu0 %v1151_v44  ;;  %1085 = vmatpush.msra.mxu2 %v1689_v42  ;;  %v1251_v51 = vsel %vm248_vm12, %v1786_v45, 0.0 }
 0xe72   :  { %1618 = vmatmul.msk.f32.vlgmr.msra.gmra.mxu2 %vm248_vm12, %v1056_v43  ;;  %v1788_v48 = vpop.eup %1787 }
 0xe73   :  { %v1250_v46 = vpop.xlane.xlu0 %1249  ;;  %v1057_v52 = vmul.f32 %v1788_v48, %v1776_v17  ;;  %v791_v48 = vld [vmem:[%s2505_s3 + $0x20] sm:$0xff] }
 0xe74   :  { %v1697_v47 = vpop.permute.xlu2 %1696  ;;  %1789 = vrcp.f32 %v1250_v46  ;;  %v793_v46 = vld [vmem:[%s2505_s3 + $0x30] sm:$0xff] }
 0xe75   :  { %v1698_v49 = vunpack.i.l.bf16 %v1697_v47  ;;  %v1699_v50 = vunpack.i.h.bf16 %v1697_v47  ;;  %v792_v47 = vld [vmem:[%s2505_s3 + $0x28] sm:$0xff] }
 0xe77   :  { %1284 = vmatpush.msrb.mxu2 %v1698_v49 }
 0xe79   :  { %1252 = vadd.xlane.f32.xlu0 %v1251_v51  ;;  %1285 = vmatpush.msrb.mxu2 %v1699_v50 }
 0xe7a   :  { %1619 = vmatmul.msk.f32.gmra.mxu2 %vm248_vm12, %v1057_v52  ;;  %v1790_v2 = vpop.eup %1789  ;;  %v814_v52 = vld [vmem:[%s2503_s1 + $0x188] sm:$0xff] }
 0xe7b   :  { %v1256_v53 = vmul.f32 %v1790_v2, %v1778_v21  ;;  %v813_v2 = vld [vmem:[%s2503_s1 + $0x180] sm:$0xff]  ;;  %1437 = vmatpush.msra.mxu1 %v814_v52 }
 0xe7d   :  { %1438 = vmatpush.msra.mxu1 %v813_v2 }
 0xe82   :  { %1691 = vrot.lane.b32.xlu1 %v2257_v61, %s1846_s23  ;;  %1630 = vmatmul.msk.f32.vlgmr.msrb.gmra.mxu2 %vm248_vm12, %v1256_v53  ;;  %v812_v53 = vld [vmem:[%s2503_s1 + $0x178] sm:$0xff] }
 0xe83   :  { %1439 = vmatpush.msra.mxu1 %v812_v53 }
 0xedc   :  { %v1150_v57 = vpop.xlane.xlu1 %1149 }
 0xee4   :  { %v1153_v54 = vpop.xlane.xlu0 %1152 }
 0xeec   :  { %v1253_v59 = vpop.xlane.xlu0 %1252 }
 0xeed   :  { %1791 = vrcp.f32 %v1253_v59  ;;  %v811_v59 = vld [vmem:[%s2503_s1 + $0x170] sm:$0xff] }
 0xeee   :  { %1793 = vrcp.f32 %v1150_v57  ;;  %1440 = vmatpush.msra.mxu1 %v811_v59  ;;  %v1520_v59 = vld [vmem:[%s2506_s4 + $0x10] sm:$0xff] }
 0xeef   :  { %1795 = vrcp.f32 %v1153_v54 }
 0xef3   :  { %v1792_v60 = vpop.eup %1791 }
 0xef4   :  { %v1692_v62 = vpop.permute.xlu1 %1691  ;;  %v1257_v20 = vmul.f32 %v1792_v60, %v1786_v45  ;;  %v1794_v63 = vpop.eup %1793  ;;  %v794_v45 = vld [vmem:[%s2505_s3 + $0x38] sm:$0xff] }
 0xef5   :  { %v1693_v0 = vunpack.i.l.bf16 %v1692_v62  ;;  %v1087_v1 = vpop.f32.mrf.mxu2  ;;  %v1694_v3 = vunpack.i.h.bf16 %v1692_v62  ;;  %v1156_v61 = vmul.f32 %v1794_v63, %v1780_v34  ;;  %v1796_v24 = vpop.eup %1795 }
 0xef6   :  { %1631 = vmatmul.msk.f32.gmra.mxu2 %vm248_vm12, %v1257_v20  ;;  %1295 = vrot.lane.b32.xlu2 %v1087_v1, %s1847_s24  ;;  %v1157_v7 = vmul.f32 %v1796_v24, %v1784_v41  ;;  %v810_v20 = vld [vmem:[%s2503_s1 + $0x168] sm:$0xff]  ;;  %v807_v24 = vld [vmem:[%s2503_s1 + $0x150] sm:$0xff] }
 0xef7   :  { %1184 = vmatpush.msra.mxu3 %v1693_v0  ;;  %v809_v0 = vld [vmem:[%s2503_s1 + $0x160] sm:$0xff]  ;;  %1441 = vmatpush.msra.mxu1 %v810_v20 }
 0xef9   :  { %1185 = vmatpush.msra.mxu3 %v1694_v3  ;;  %v808_v3 = vld [vmem:[%s2503_s1 + $0x158] sm:$0xff]  ;;  %1442 = vmatpush.msra.mxu1 %v809_v0 }
 0xefa   :  { %1624 = vmatmul.msk.f32.vlgmr.msra.gmra.mxu3 %vm248_vm12, %v1156_v61 }
 0xefb   :  { %1424 = vmatpush.msrb.mxu3 %v794_v45  ;;  %1443 = vmatpush.msra.mxu1 %v808_v3 }
 0xefd   :  { %v1090_v6 = vpop.f32.mrf.mxu2  ;;  %1425 = vmatpush.msrb.mxu3 %v793_v46  ;;  %1444 = vmatpush.msra.mxu1 %v807_v24 }
 0xefe   :  { %1297 = vrot.lane.b32.xlu2 %v1090_v6, %s1847_s24 }
 0xeff   :  { %1426 = vmatpush.msrb.mxu3 %v792_v47 }
 0xf01   :  { %1427 = vmatpush.msrb.mxu3 %v791_v48 }
 0xf02   :  { %1625 = vmatmul.msk.f32.gmra.mxu3 %vm248_vm12, %v1157_v7 }
 0xf05   :  { %v1287_v8 = vpop.f32.mrf.mxu2 }
 0xf06   :  { %1311 = vrot.lane.b32.xlu1 %v1287_v8, %s1849_s26  ;;  %v806_v8 = vld [vmem:[%s2503_s1 + $0x148] sm:$0xff] }
 0xf07   :  { %1445 = vmatpush.msra.mxu1 %v806_v8 }
 0xf09   :  { %1446 = vmatpush.msra.mxu1 %v805_v55 }
 0xf50   :  { %v1296_v15 = vpop.permute.xlu2 %1295 }
 0xf51   :  { %v1317_v58 = vsel %vm212_vm11, %v2310_v5, %v1296_v15  ;;  %v1711_v5 = vld [vmem:[%s2507_s5 + $0x1b] ss:$0 sm:$0xff]  ;;  %v1713_v15 = vld [vmem:[%s2507_s5 + $0x1d] ss:$0 sm:$0xff] }
 0xf58   :  { %v1298_v18 = vpop.permute.xlu2 %1297 }
 0xf59   :  { %v1318_v23 = vsel %vm212_vm11, %v2312_v56, %v1298_v18  ;;  %v803_v18 = vld [vmem:[%s2503_s1 + $0x130] sm:$0xff] }
 0xf78   :  { %v1312_v16 = vpop.permute.xlu1 %1311 }
 0xf79   :  { %v1290_v30 = vpop.f32.mrf.mxu2 }
 0xf7a   :  { %1313 = vrot.lane.b32.xlu2 %v1290_v30, %s1849_s26 }
 0xf7d   :  { %v1187_v10 = vpop.f32.mrf.mxu3 }
 0xf7e   :  { %1303 = vrot.lane.b32.xlu0 %v1187_v10, %s1848_s25 }
 0xf85   :  { %v1190_v11 = vpop.f32.mrf.mxu3 }
 0xf86   :  { %1305 = vrot.lane.b32.xlu1 %v1190_v11, %s1848_s25  ;;  %v1712_v11 = vld [vmem:[%s2507_s5 + $0x1c] ss:$0 sm:$0xff] }
 0xfd4   :  { %v1314_v27 = vpop.permute.xlu2 %1313 }
 0xff0   :  { %v1304_v17 = vpop.permute.xlu0 %1303 }
 0xff1   :  { %v1319_v21 = vsel %vm248_vm12, %v1317_v58, %v1304_v17  ;;  %v804_v58 = vld [vmem:[%s2503_s1 + $0x138] sm:$0xff] }
 0xff2   :  { %v1321_v22 = vsel %vm634_vm13, %v1319_v21, %v1312_v16  ;;  %1447 = vmatpush.msra.mxu1 %v804_v58 }
 0xff3   :  { %1632 = vmatmul.msk.f32.vlgmr.msra.gmra.mxu0 %vm118_vm3, %v1321_v22 }
 0xff4   :  { %1448 = vmatpush.msra.mxu1 %v803_v18 }
 0xff8   :  { %v1306_v25 = vpop.permute.xlu1 %1305 }
 0xff9   :  { %v1320_v28 = vsel %vm248_vm12, %v1318_v23, %v1306_v25  ;;  %v802_v23 = vld [vmem:[%s2503_s1 + $0x128] sm:$0xff] }
 0xffa   :  { %v1322_v29 = vsel %vm634_vm13, %v1320_v28, %v1314_v27  ;;  %1449 = vmatpush.msra.mxu1 %v802_v23 }
 0xffb   :  { %1633 = vmatmul.msk.f32.gmra.mxu0 %vm118_vm3, %v1322_v29 }
0x1070   :  { %v1347_v26 = vpop.f32.mrf.mxu0 }
0x1071   :  { %v1348_v31 = vadd.f32 %v1711_v5, %v1347_v26  ;;  %v801_v26 = vld [vmem:[%s2503_s1 + $0x120] sm:$0xff] }
0x1072   :  { %1450 = vmatpush.msra.mxu1 %v801_v26 }
0x1073   :  { %v2367_v33 = vadd.f32 %v1348_v31, %v2207_v4  ;;  %v800_v31 = vld [vmem:[%s2503_s1 + $0x118] sm:$0xff] }
0x1074   :  { %1451 = vmatpush.msra.mxu1 %v800_v31 }
0x1075   :  { %v1355_v56 = vsel %vm118_vm3, %v2367_v33, 0.0 }
0x1076   :  { %1356 = vadd.xlane.f32.xlu1 %v1355_v56  ;;  %v799_v56 = vld [vmem:[%s2503_s1 + $0x110] sm:$0xff] }
0x1077   :  { %1452 = vmatpush.msra.mxu1 %v799_v56 }
0x1078   :  { %v1350_v34 = vpop.f32.mrf.mxu0 }
0x1079   :  { %v1351_v19 = vadd.f32 %v1711_v5, %v1350_v34  ;;  %v1714_v34 = vld [vmem:[%s2507_s5 + $0x1e] ss:$0 sm:$0xff] }
0x107b   :  { %v2372_v35 = vadd.f32 %v1351_v19, %v2212_v9 }
0x107d   :  { %v1358_v36 = vsel %vm118_vm3, %v2372_v35, 0.0 }
0x107e   :  { %1359 = vadd.xlane.f32.xlu0 %v1358_v36 }
0x10e9   :  { %v1357_v37 = vpop.xlane.xlu1 %1356 }
0x10ea   :  { %v1361_v38 = vmul.f32 %v1357_v37, %v1933_v32 }
0x10ec   :  { %v1363_v39 = vsub.f32 %v2367_v33, %v1361_v38 }
0x10ee   :  { %v1365_v4 = vmul.f32 %v1363_v39, %v1363_v39 }
0x10f0   :  { %v1367_v40 = vsel %vm118_vm3, %v1365_v4, 0.0 }
0x10f1   :  { %1368 = vadd.xlane.f32.xlu2 %v1367_v40  ;;  %v1360_v41 = vpop.xlane.xlu0 %1359  ;;  %v1715_v40 = vld [vmem:[%s2507_s5 + $0x1f] ss:$0 sm:$0xff] }
0x10f2   :  { %v1362_v42 = vmul.f32 %v1360_v41, %v1933_v32 }
0x10f4   :  { %v2381_v43 = vsub.f32 %v2372_v35, %v1362_v42 }
0x10f6   :  { %v1366_v9 = vmul.f32 %v2381_v43, %v2381_v43 }
0x10f8   :  { %v1370_v44 = vsel %vm118_vm3, %v1366_v9, 0.0 }
0x10f9   :  { %1371 = vadd.xlane.f32.xlu1 %v1370_v44 }
0x1164   :  { %v1369_v49 = vpop.xlane.xlu2 %1368 }
0x1165   :  { %v1373_v50 = vmul.f32 %v1369_v49, %v1933_v32 }
0x1167   :  { %v1375_v51 = vadd.f32 1e-05, %v1373_v50 }
0x1169   :  { %1797 = vrsqrt.f32 %v1375_v51  ;;  %vm1383_vm12 = vweird.f32 %v1375_v51 }
0x116c   :  { %v1372_v54 = vpop.xlane.xlu1 %1371 }
0x116d   :  { %v1374_v57 = vmul.f32 %v1372_v54, %v1933_v32 }
0x116f   :  { %v1798_v60 = vpop.eup %1797  ;;  %v1376_v62 = vadd.f32 1e-05, %v1374_v57 }
0x1170   :  { %v1378_v63 = vmul.f32 %v1798_v60, %v1375_v51  ;;  %vm1384_vm11 = vweird.f32 %v1798_v60 }
0x1171   :  { %1799 = vrsqrt.f32 %v1376_v62  ;;  %vm1385_vm13 = vmor %vm1383_vm12, %vm1384_vm11  ;;  %vm1393_vm1 = vweird.f32 %v1376_v62 }
0x1172   :  { %v1379_v1 = vmul.f32 %v1798_v60, %v1378_v63 }
0x1174   :  { %v1380_v61 = vmul.f32 0.5, %v1379_v1 }
0x1176   :  { %v1381_v6 = vsub.f32 1.5, %v1380_v61 }
0x1177   :  { %v1800_v7 = vpop.eup %1799 }
0x1178   :  { %v1382_v30 = vmul.f32 %v1798_v60, %v1381_v6  ;;  %v1388_v10 = vmul.f32 %v1800_v7, %v1376_v62  ;;  %vm1394_vm15 = vweird.f32 %v1800_v7  ;;  %v1518_v62 = vld [vmem:[%s2506_s4] sm:$0xff] }
0x1179   :  { %vm1395_vm2 = vmor %vm1393_vm1, %vm1394_vm15 }
0x117a   :  { %v1386_v12 = vsel %vm1385_vm13, %v1798_v60, %v1382_v30  ;;  %v1389_v13 = vmul.f32 %v1800_v7, %v1388_v10  ;;  %v1519_v60 = vld [vmem:[%s2506_s4 + $0x8] sm:$0xff] }
0x117b   :  { %v1397_v14 = vmul.f32 %v1386_v12, %v1363_v39  ;;  %v1716_v12 = vld [vmem:[%s2507_s5 + $0x20] ss:$0 sm:$0xff] }
0x117c   :  { %v1390_v16 = vmul.f32 0.5, %v1389_v13 }
0x117d   :  { %v1400_v17 = vmul.f32 %v1712_v11, %v1397_v14 }
0x117e   :  { %v1391_v21 = vsub.f32 1.5, %v1390_v16 }
0x117f   :  { %v1403_v22 = vadd.f32 %v1713_v15, %v1400_v17 }
0x1180   :  { %v1392_v25 = vmul.f32 %v1800_v7, %v1391_v21 }
0x1181   :  { %1634 = vmatmul.msk.f32.vlgmr.msrb.gmra.mxu3 %vm118_vm3, %v1403_v22 }
0x1182   :  { %v1396_v27 = vsel %vm1395_vm2, %v1800_v7, %v1392_v25 }
0x1183   :  { %v1398_v28 = vmul.f32 %v1396_v27, %v2381_v43 }
0x1185   :  { %v1401_v29 = vmul.f32 %v1712_v11, %v1398_v28  ;;  %v1718_v28 = vld [vmem:[%s2507_s5 + $0x22] ss:$0 sm:$0xff] }
0x1187   :  { %v1404_v5 = vadd.f32 %v1713_v15, %v1401_v29  ;;  %v1717_v15 = vld [vmem:[%s2507_s5 + $0x21] ss:$0 sm:$0xff] }
0x1189   :  { %1635 = vmatmul.msk.f32.gmra.mxu3 %vm118_vm3, %v1404_v5 }
0x1204   :  { %v1429_v19 = vpop.f32.mrf.mxu3 }
0x1205   :  { %v1430_v36 = vadd.f32 %v1714_v34, %v1429_v19 }
0x1207   :  { %v1435_v37 = vmax.f32 %v1430_v36, 0.0 }
0x1209   :  { %1453 = vmatmul.f32.vlgmr.msra.gmra.mxu1 %v1435_v37 }
0x120c   :  { %v1432_v38 = vpop.f32.mrf.mxu3 }
0x120d   :  { %v1433_v39 = vadd.f32 %v1714_v34, %v1432_v38 }
0x120f   :  { %v1436_v4 = vmax.f32 %v1433_v39, 0.0 }
0x1211   :  { %1456 = vmatmul.f32.gmra.mxu1 %v1436_v4 }
0x1286   :  { %v1454_v41 = vpop.f32.mrf.mxu1 }
0x1287   :  { %v1460_v42 = vadd.f32 %v1454_v41, %v2367_v33 }
0x1289   :  { %v1463_v43 = vadd.f32 %v1715_v40, %v1460_v42 }
0x128b   :  { %v1468_v9 = vsel %vm118_vm3, %v1463_v43, 0.0 }
0x128c   :  { %1469 = vadd.xlane.f32.xlu0 %v1468_v9 }
0x128e   :  { %v1457_v44 = vpop.f32.mrf.mxu1 }
0x128f   :  { %v1461_v45 = vadd.f32 %v1457_v44, %v2372_v35  ;;  %v1521_v35 = vld [vmem:[%s2506_s4 + $0x18] sm:$0xff] }
0x1290   :  { %1541 = vmatpush.msra.mxu2 %v1521_v35 }
0x1291   :  { %v1464_v46 = vadd.f32 %v1715_v40, %v1461_v45 }
0x1292   :  { %1542 = vmatpush.msra.mxu2 %v1520_v59 }
0x1293   :  { %v1471_v47 = vsel %vm118_vm3, %v1464_v46, 0.0 }
0x1294   :  { %1472 = vadd.xlane.f32.xlu2 %v1471_v47  ;;  %1543 = vmatpush.msra.mxu2 %v1519_v60 }
0x1296   :  { %1544 = vmatpush.msra.mxu2 %v1518_v62 }
0x12ff   :  { %v1470_v48 = vpop.xlane.xlu0 %1469 }
0x1300   :  { %v1474_v49 = vmul.f32 %v1470_v48, %v1933_v32 }
0x1302   :  { %v1476_v50 = vsub.f32 %v1463_v43, %v1474_v49 }
0x1304   :  { %v1478_v51 = vmul.f32 %v1476_v50, %v1476_v50 }
0x1306   :  { %v1480_v52 = vsel %vm118_vm3, %v1478_v51, 0.0 }
0x1307   :  { %1481 = vadd.xlane.f32.xlu1 %v1480_v52  ;;  %v1473_v33 = vpop.xlane.xlu2 %1472 }
0x1308   :  { %v1475_v2 = vmul.f32 %v1473_v33, %v1933_v32 }
0x130a   :  { %v1477_v53 = vsub.f32 %v1464_v46, %v1475_v2 }
0x130c   :  { %v1479_v54 = vmul.f32 %v1477_v53, %v1477_v53 }
0x130e   :  { %v1483_v57 = vsel %vm118_vm3, %v1479_v54, 0.0 }
0x130f   :  { %1484 = vadd.xlane.f32.xlu0 %v1483_v57 }
0x137a   :  { %v1482_v20 = vpop.xlane.xlu1 %1481 }
0x137b   :  { %v1486_v63 = vmul.f32 %v1482_v20, %v1933_v32 }
0x137d   :  { %v1488_v0 = vadd.f32 1e-05, %v1486_v63 }
0x137f   :  { %1801 = vrsqrt.f32 %v1488_v0  ;;  %vm1496_vm5 = vweird.f32 %v1488_v0 }
0x1382   :  { %v1485_v1 = vpop.xlane.xlu0 %1484 }
0x1383   :  { %v1487_v3 = vmul.f32 %v1485_v1, %v1933_v32 }
0x1385   :  { %v1802_v61 = vpop.eup %1801  ;;  %v1489_v24 = vadd.f32 1e-05, %v1487_v3 }
0x1386   :  { %v1491_v6 = vmul.f32 %v1802_v61, %v1488_v0  ;;  %vm1497_vm4 = vweird.f32 %v1802_v61 }
0x1387   :  { %1803 = vrsqrt.f32 %v1489_v24  ;;  %vm1498_vm6 = vmor %vm1496_vm5, %vm1497_vm4  ;;  %vm1506_vm8 = vweird.f32 %v1489_v24 }
0x1388   :  { %v1492_v7 = vmul.f32 %v1802_v61, %v1491_v6 }
0x138a   :  { %v1493_v8 = vmul.f32 0.5, %v1492_v7 }
0x138c   :  { %v1494_v30 = vsub.f32 1.5, %v1493_v8 }
0x138d   :  { %v1804_v10 = vpop.eup %1803 }
0x138e   :  { %v1495_v11 = vmul.f32 %v1802_v61, %v1494_v30  ;;  %v1501_v55 = vmul.f32 %v1804_v10, %v1489_v24  ;;  %vm1507_vm7 = vweird.f32 %v1804_v10 }
0x138f   :  { %vm1508_vm9 = vmor %vm1506_vm8, %vm1507_vm7 }
0x1390   :  { %v1499_v13 = vsel %vm1498_vm6, %v1802_v61, %v1495_v11  ;;  %v1502_v14 = vmul.f32 %v1804_v10, %v1501_v55 }
0x1391   :  { %v1510_v32 = vmul.f32 %v1499_v13, %v1476_v50 }
0x1392   :  { %v1503_v58 = vmul.f32 0.5, %v1502_v14 }
0x1393   :  { %v1513_v16 = vmul.f32 %v1716_v12, %v1510_v32 }
0x1394   :  { %v1504_v17 = vsub.f32 1.5, %v1503_v58 }
0x1395   :  { %v1516_v18 = vadd.f32 %v1717_v15, %v1513_v16 }
0x1396   :  { %v1505_v21 = vmul.f32 %v1804_v10, %v1504_v17 }
0x1397   :  { %1636 = vmatmul.msk.f32.vlgmr.msra.gmra.mxu2 %vm118_vm3, %v1516_v18 }
0x1398   :  { %v1509_v22 = vsel %vm1508_vm9, %v1804_v10, %v1505_v21 }
0x1399   :  { %v1511_v23 = vmul.f32 %v1509_v22, %v1477_v53 }
0x139b   :  { %v1514_v25 = vmul.f32 %v1716_v12, %v1511_v23 }
0x139d   :  { %v1517_v27 = vadd.f32 %v1717_v15, %v1514_v25 }
0x139f   :  { %1637 = vmatmul.msk.f32.gmra.mxu2 %vm118_vm3, %v1517_v27 }
0x141a   :  { %v1546_v29 = vpop.f32.mrf.mxu2 }
0x141b   :  { %v1547_v5 = vadd.f32 %v1718_v28, %v1546_v29 }
0x141d   :  { %1552 = vst.msk [vmem:[#allocation2] sm:$0xff] %vm50_vm0, %v1547_v5 }
0x1422   :  { %v1549_v26 = vpop.f32.mrf.mxu2 }
0x1423   :  { %v1550_v31 = vadd.f32 %v1718_v28, %v1549_v26 }
0x1425   :  { %1553 = vst.msk [vmem:[#allocation2 + $0x8] sm:$0xff] %vm50_vm0, %v1550_v31 }
0x1426   :  { %1566 = dma.vmem_to_hbm [thread:$0]  %s1559_s30, 256, %s1561_s15, [#allocation3], %s1851_s16, %s1851_s16, %s1847_s24  }
0x1427   :  { %1831 = dma.done.wait [#allocation3], 256  }
0x1428   :  { %1832 = vsyncadd [#allocation3], 4294967040 }
0x1429   :  { %1571 = vsyncpa [#allocation3], 1 }

</bundles_post_ra>
